<compile_context>
chip_gen: v7x
topology: tpu7x:2x2x1
jax: 0.10.0
libtpu: 0.0.40
codegen_flags: <defaults>
</compile_context>

<pallas_src>
import jax
import jax.numpy as jnp
from jax.experimental import pallas as pl
from jax.experimental.pallas import tpu as pltpu
import numpy as np

# ----- model / problem sizes (small, consistent with the module) -----
LIMIT = 5          # sequence length (hard-coded in the PyTorch module)
BATCH_SIZE = 8
EMBED_DIM = 16
HIDDEN_DIM = 32
TAGSET_SIZE = 8


def _round_up(x, m):
    return ((x + m - 1) // m) * m


def lstm_tagger_kernel(x_ref, wih_ref, whh_ref, b_ref, wtag_ref, btag_ref,
                       scores_ref):
    """One batch-block of the LSTM recurrence + tag head, fully in VMEM.

    Transposed layout: gates/features on sublanes, batch on lanes.

    x_ref:      (SEQ, E, BB)  bf16  time-major input block (batch on lanes)
    wih_ref:    (4H, E)       bf16  W_ih with i/f/o rows pre-scaled by 0.5
    whh_ref:    (4H, H)       f32   W_hh with i/f/o rows pre-scaled by 0.5
    b_ref:      (4H, 1)       f32   (b_ih + b_hh), i/f/o rows pre-scaled by 0.5
    wtag_ref:   (T, H)        f32   hidden2tag weight (PyTorch layout)
    btag_ref:   (T, 1)        f32   hidden2tag bias
    scores_ref: (T, BB)       f32   softmax tag scores, lane-dense
    """
    seq = x_ref.shape[0]
    bb = x_ref.shape[2]
    G, H = whh_ref.shape                      # G = 4H

    # Hoisted constants (JAX does not CSE broadcast_in_dim -> build them once,
    # outside the unrolled recurrence).
    row = jax.lax.broadcasted_iota(jnp.int32, (G, 1), 0)
    is_g = (row >= 2 * H) & (row < 3 * H)     # g-gate rows keep plain tanh
    aff_a = jnp.broadcast_to(jnp.where(is_g, 1.0, 0.5).astype(jnp.float32),
                             (G, bb))
    aff_b = jnp.broadcast_to(jnp.where(is_g, 0.0, 0.5).astype(jnp.float32),
                             (G, bb))
    bias = jnp.broadcast_to(b_ref[...], (G, bb))

    # Recurrent state lives in vregs; the tiny static loop is fully unrolled.
    h = jnp.zeros((H, bb), jnp.float32)
    c = jnp.zeros((H, bb), jnp.float32)

    for t in range(seq):
        # Input projection (bf16 MXU, f32 accumulate) depends only on inputs,
        # so it sits off the serial h/c chain even though it is written here.
        xw_t = jnp.dot(wih_ref[...], x_ref[t],
                       preferred_element_type=jnp.float32) + bias      # (4H, BB)
        gates = xw_t + jnp.dot(whh_ref[...], h,
                               preferred_element_type=jnp.float32)     # (4H, BB)
        # Single EUP pass over all four gates: rows were pre-scaled so that
        # sigmoid(v) = 0.5*(1 + tanh(v/2)) for i/f/o and tanh(v) for g.
        y = jnp.tanh(gates)
        z = y * aff_a + aff_b                 # VPU affine, constants hoisted
        i_g = z[0 * H:1 * H, :]
        f_g = z[1 * H:2 * H, :]
        g_g = z[2 * H:3 * H, :]
        o_g = z[3 * H:4 * H, :]
        c = f_g * c + i_g * g_g
        h = o_g * jnp.tanh(c)
        # relu(lstm_out) in the PyTorch module never feeds tag_scores; omitted.

    # Tag head on the final hidden state, directly in (T, BB) orientation
    # (lane-dense output, no in-kernel transpose), then softmax over sublanes.
    tag = jnp.dot(wtag_ref[...], h,
                  preferred_element_type=jnp.float32) + btag_ref[...]  # (T, BB)
    m = jnp.max(tag, axis=0, keepdims=True)
    ex = jnp.exp(tag - m)
    denom = jnp.sum(ex, axis=0, keepdims=True)
    scores_ref[...] = ex * pl.reciprocal(denom, approx=True)


def lstm_tagger_forward(sentence, params, *, batch_block=256):
    """Glue: view + layout plumbing + batch tiling + pallas_call.

    Returns (B, T) softmax tag scores.
    """
    wih, whh, b_ih, b_hh, wtag, btag = params
    B = sentence.shape[0]
    E, H, T = EMBED_DIM, HIDDEN_DIM, TAGSET_SIZE
    G = 4 * H

    # sentence.view(LIMIT, BATCH_SIZE, -1): flat row-major reinterpretation;
    # then put the batch on the lane axis: (LIMIT, E, B).
    x = sentence.reshape(LIMIT, B, E).transpose(0, 2, 1)

    # Batch block: always a multiple of 128 (lane-dense stores, full MXU rows).
    # Default 256 matches the 256-wide v6e/v7x MXU; batches > batch_block give
    # >=2 grid blocks so the "parallel" axis shards across both v7x TCs.
    batch_block = _round_up(max(batch_block, 128), 128)
    bb = max(128, min(batch_block, _round_up(B, 128)))
    pad = (-B) % bb
    if pad:
        x = jnp.pad(x, ((0, 0), (0, 0), (0, pad)))
    bp = B + pad
    nblk = bp // bb

    # Pre-scale the i/f/o gate rows by 0.5 (exact power-of-two scaling) so the
    # kernel needs only one tanh pass per step; g rows keep scale 1.0.
    gs = np.full((G, 1), 0.5, np.float32)
    gs[2 * H:3 * H] = 1.0
    gate_scale = jnp.asarray(gs)

    wih_s = (wih * gate_scale).astype(jnp.bfloat16)       # (4H, E)  bf16 MXU operand
    whh_s = (whh * gate_scale).astype(jnp.float32)        # (4H, H)  f32 (serial chain)
    bias_s = ((b_ih + b_hh).reshape(G, 1) * gate_scale)   # (4H, 1)  f32
    btag_c = btag.reshape(T, 1)                           # (T, 1)
    x_bf = x.astype(jnp.bfloat16)                         # (LIMIT, E, bp) bf16

    const = lambda i: (0, 0)                              # weights stay resident
    scores_t = pl.pallas_call(
        lstm_tagger_kernel,
        out_shape=jax.ShapeDtypeStruct((T, bp), jnp.float32),
        grid=(nblk,),
        in_specs=[
            pl.BlockSpec((LIMIT, E, bb), lambda i: (0, 0, i)),
            pl.BlockSpec((G, E), const),
            pl.BlockSpec((G, H), const),
            pl.BlockSpec((G, 1), const),
            pl.BlockSpec((T, H), const),
            pl.BlockSpec((T, 1), const),
        ],
        out_specs=pl.BlockSpec((T, bb), lambda i: (0, i)),
        compiler_params=pltpu.CompilerParams(
            dimension_semantics=("parallel",)),
    )(x_bf, wih_s, whh_s, bias_s, wtag, btag_c)

    # (T, bp) -> (B, T): trivial XLA transpose + slice of the padded rows.
    return scores_t.T[:B]


def reference_forward(sentence, params):
    """Pure-JAX f32 reference with the same PyTorch semantics."""
    wih, whh, b_ih, b_hh, wtag, btag = params
    B = sentence.shape[0]
    H = HIDDEN_DIM
    x = sentence.reshape(LIMIT, B, EMBED_DIM)
    h = jnp.zeros((B, H), jnp.float32)
    c = jnp.zeros((B, H), jnp.float32)
    for t in range(LIMIT):
        gates = x[t] @ wih.T + h @ whh.T + b_ih + b_hh
        i = jax.nn.sigmoid(gates[:, 0 * H:1 * H])
        f = jax.nn.sigmoid(gates[:, 1 * H:2 * H])
        g = jnp.tanh(gates[:, 2 * H:3 * H])
        o = jax.nn.sigmoid(gates[:, 3 * H:4 * H])
        c = f * c + i * g
        h = o * jnp.tanh(c)
    tag_space = h @ wtag.T + btag
    return jax.nn.softmax(tag_space, axis=-1)


def init_params(key):
    """Deterministic init matching PyTorch shapes: U(-1/sqrt(H), 1/sqrt(H))."""
    ks = jax.random.split(key, 6)
    s = 1.0 / np.sqrt(HIDDEN_DIM)
    wih = jax.random.uniform(ks[0], (4 * HIDDEN_DIM, EMBED_DIM), jnp.float32, -s, s)
    whh = jax.random.uniform(ks[1], (4 * HIDDEN_DIM, HIDDEN_DIM), jnp.float32, -s, s)
    b_ih = jax.random.uniform(ks[2], (4 * HIDDEN_DIM,), jnp.float32, -s, s)
    b_hh = jax.random.uniform(ks[3], (4 * HIDDEN_DIM,), jnp.float32, -s, s)
    wtag = jax.random.uniform(ks[4], (TAGSET_SIZE, HIDDEN_DIM), jnp.float32, -s, s)
    btag = jax.random.uniform(ks[5], (TAGSET_SIZE,), jnp.float32, -s, s)
    return wih, whh, b_ih, b_hh, wtag, btag


if __name__ == "__main__":
    key = jax.random.PRNGKey(0)
    k_data, k_data2, k_param = jax.random.split(key, 3)
    params = init_params(k_param)

    # bf16 MXU operands on the input projection + approx reciprocal in the
    # softmax -> relaxed tolerance vs. the pure-f32 reference.
    RTOL, ATOL = 2e-2, 5e-3

    # Small case, matching the module defaults: (BATCH_SIZE, LIMIT * EMBED_DIM),
    # viewed inside the forward as (LIMIT, BATCH_SIZE, EMBED_DIM).
    sentence = jax.random.normal(k_data, (BATCH_SIZE, LIMIT * EMBED_DIM), jnp.float32)
    scores = jax.block_until_ready(lstm_tagger_forward(sentence, params))
    ref = reference_forward(sentence, params)
    np.testing.assert_allclose(np.asarray(scores), np.asarray(ref),
                               rtol=RTOL, atol=ATOL)
    assert scores.shape == (BATCH_SIZE, TAGSET_SIZE)

    # Larger batch exercises the padded / multi-block "parallel" grid path
    # (640 -> 3 blocks of 256 with batch padding).
    big = jax.random.normal(k_data2, (640, LIMIT * EMBED_DIM), jnp.float32)
    scores_big = jax.block_until_ready(lstm_tagger_forward(big, params))
    ref_big = reference_forward(big, params)
    np.testing.assert_allclose(np.asarray(scores_big), np.asarray(ref_big),
                               rtol=RTOL, atol=ATOL)
    assert scores_big.shape == (640, TAGSET_SIZE)

    print("KERNEL_OK")
</pallas_src>

<mosaic_0001>
module attributes {stable_mosaic.version = 11 : i64} {
  func.func @lstm_tagger_kernel(%arg0: i32, %arg1: memref<5x16x128xbf16, #tpu.memory_space<vmem>>, %arg2: memref<128x16xbf16, #tpu.memory_space<vmem>>, %arg3: memref<128x32xf32, #tpu.memory_space<vmem>>, %arg4: memref<128x1xf32, #tpu.memory_space<vmem>>, %arg5: memref<8x32xf32, #tpu.memory_space<vmem>>, %arg6: memref<8x1xf32, #tpu.memory_space<vmem>>, %arg7: memref<8x128xf32, #tpu.memory_space<vmem>>) attributes {dimension_semantics = [#tpu.dimension_semantics<parallel>], iteration_bounds = array<i64: 1>, scalar_prefetch = 0 : i64, scratch_operands = 0 : i64, tpu.core_type = #tpu.core_type<tc>, window_params = [{transform_indices = @transform_0, window_bounds = array<i64: 5, 16, 128>}, {pipeline_mode = #tpu.pipeline_mode<synchronous>, transform_indices = @transform_1, window_bounds = array<i64: 128, 16>}, {pipeline_mode = #tpu.pipeline_mode<synchronous>, transform_indices = @transform_2, window_bounds = array<i64: 128, 32>}, {pipeline_mode = #tpu.pipeline_mode<synchronous>, transform_indices = @transform_3, window_bounds = array<i64: 128, 1>}, {pipeline_mode = #tpu.pipeline_mode<synchronous>, transform_indices = @transform_4, window_bounds = array<i64: 8, 32>}, {pipeline_mode = #tpu.pipeline_mode<synchronous>, transform_indices = @transform_5, window_bounds = array<i64: 8, 1>}, {transform_indices = @transform_6, window_bounds = array<i64: 8, 128>}]} {
    %0 = tpu.iota {dimensions = array<i32: 0>} : vector<128x1xi32>
    %c64_i32 = arith.constant 64 : i32
    %1 = vector.broadcast %c64_i32 : i32 to vector<128x1xi32>
    %2 = arith.cmpi sge, %0, %1 : vector<128x1xi32>
    %c96_i32 = arith.constant 96 : i32
    %3 = vector.broadcast %c96_i32 : i32 to vector<128x1xi32>
    %4 = arith.cmpi slt, %0, %3 : vector<128x1xi32>
    %5 = arith.andi %2, %4 : vector<128x1xi1>
    %cst = arith.constant 1.000000e+00 : f32
    %cst_0 = arith.constant 5.000000e-01 : f32
    %6 = vector.broadcast %cst : f32 to vector<128x1xf32>
    %7 = vector.broadcast %cst_0 : f32 to vector<128x1xf32>
    %8 = arith.select %5, %6, %7 : vector<128x1xi1>, vector<128x1xf32>
    %9 = vector.shape_cast %8 : vector<128x1xf32> to vector<128x1xf32>
    %10 = vector.broadcast %9 : vector<128x1xf32> to vector<128x128xf32>
    %cst_1 = arith.constant 0.000000e+00 : f32
    %cst_2 = arith.constant 5.000000e-01 : f32
    %11 = vector.broadcast %cst_1 : f32 to vector<128x1xf32>
    %12 = vector.broadcast %cst_2 : f32 to vector<128x1xf32>
    %13 = arith.select %5, %11, %12 : vector<128x1xi1>, vector<128x1xf32>
    %14 = vector.shape_cast %13 : vector<128x1xf32> to vector<128x1xf32>
    %15 = vector.broadcast %14 : vector<128x1xf32> to vector<128x128xf32>
    %c0 = arith.constant 0 : index
    %c0_3 = arith.constant 0 : index
    %16 = vector.load %arg4[%c0, %c0_3] : memref<128x1xf32, #tpu.memory_space<vmem>>, vector<128x1xf32>
    %17 = vector.shape_cast %16 : vector<128x1xf32> to vector<128x1xf32>
    %18 = vector.broadcast %17 : vector<128x1xf32> to vector<128x128xf32>
    %cst_4 = arith.constant 0.000000e+00 : f32
    %19 = vector.broadcast %cst_4 : f32 to vector<32x128xf32>
    %cst_5 = arith.constant 0.000000e+00 : f32
    %20 = vector.broadcast %cst_5 : f32 to vector<32x128xf32>
    %c0_6 = arith.constant 0 : index
    %c0_7 = arith.constant 0 : index
    %21 = vector.load %arg2[%c0_6, %c0_7] : memref<128x16xbf16, #tpu.memory_space<vmem>>, vector<128x16xbf16>
    %c0_8 = arith.constant 0 : index
    %c0_9 = arith.constant 0 : index
    %c0_10 = arith.constant 0 : index
    %22 = vector.load %arg1[%c0_8, %c0_9, %c0_10] : memref<5x16x128xbf16, #tpu.memory_space<vmem>>, vector<1x16x128xbf16>
    %23 = vector.shape_cast %22 : vector<1x16x128xbf16> to vector<16x128xbf16>
    %cst_11 = arith.constant dense<0.000000e+00> : vector<128x128xf32>
    %24 = tpu.matmul %21, %23, %cst_11 {dimension_numbers = #tpu.dot_dimension_numbers<[1], [0], [0], [1], [0, 0, 1, 1], [], []>} : vector<128x16xbf16>, vector<16x128xbf16>, vector<128x128xf32> -> vector<128x128xf32>
    %25 = arith.addf %24, %18 : vector<128x128xf32>
    %c0_12 = arith.constant 0 : index
    %c0_13 = arith.constant 0 : index
    %26 = vector.load %arg3[%c0_12, %c0_13] : memref<128x32xf32, #tpu.memory_space<vmem>>, vector<128x32xf32>
    %cst_14 = arith.constant dense<0.000000e+00> : vector<128x128xf32>
    %27 = tpu.matmul %26, %19, %cst_14 {dimension_numbers = #tpu.dot_dimension_numbers<[1], [0], [0], [1], [0, 0, 1, 1], [], []>} : vector<128x32xf32>, vector<32x128xf32>, vector<128x128xf32> -> vector<128x128xf32>
    %28 = arith.addf %25, %27 : vector<128x128xf32>
    %29 = math.tanh %28 : vector<128x128xf32>
    %30 = arith.mulf %29, %10 : vector<128x128xf32>
    %31 = arith.addf %30, %15 : vector<128x128xf32>
    %32 = vector.extract_strided_slice %31 {offsets = [0, 0], sizes = [32, 128], strides = [1, 1]} : vector<128x128xf32> to vector<32x128xf32>
    %33 = vector.extract_strided_slice %31 {offsets = [32, 0], sizes = [32, 128], strides = [1, 1]} : vector<128x128xf32> to vector<32x128xf32>
    %34 = vector.extract_strided_slice %31 {offsets = [64, 0], sizes = [32, 128], strides = [1, 1]} : vector<128x128xf32> to vector<32x128xf32>
    %35 = vector.extract_strided_slice %31 {offsets = [96, 0], sizes = [32, 128], strides = [1, 1]} : vector<128x128xf32> to vector<32x128xf32>
    %36 = arith.mulf %33, %20 : vector<32x128xf32>
    %37 = arith.mulf %32, %34 : vector<32x128xf32>
    %38 = arith.addf %36, %37 : vector<32x128xf32>
    %39 = math.tanh %38 : vector<32x128xf32>
    %40 = arith.mulf %35, %39 : vector<32x128xf32>
    %c0_15 = arith.constant 0 : index
    %c0_16 = arith.constant 0 : index
    %41 = vector.load %arg2[%c0_15, %c0_16] : memref<128x16xbf16, #tpu.memory_space<vmem>>, vector<128x16xbf16>
    %c1 = arith.constant 1 : index
    %c0_17 = arith.constant 0 : index
    %c0_18 = arith.constant 0 : index
    %42 = vector.load %arg1[%c1, %c0_17, %c0_18] : memref<5x16x128xbf16, #tpu.memory_space<vmem>>, vector<1x16x128xbf16>
    %43 = vector.shape_cast %42 : vector<1x16x128xbf16> to vector<16x128xbf16>
    %cst_19 = arith.constant dense<0.000000e+00> : vector<128x128xf32>
    %44 = tpu.matmul %41, %43, %cst_19 {dimension_numbers = #tpu.dot_dimension_numbers<[1], [0], [0], [1], [0, 0, 1, 1], [], []>} : vector<128x16xbf16>, vector<16x128xbf16>, vector<128x128xf32> -> vector<128x128xf32>
    %45 = arith.addf %44, %18 : vector<128x128xf32>
    %c0_20 = arith.constant 0 : index
    %c0_21 = arith.constant 0 : index
    %46 = vector.load %arg3[%c0_20, %c0_21] : memref<128x32xf32, #tpu.memory_space<vmem>>, vector<128x32xf32>
    %cst_22 = arith.constant dense<0.000000e+00> : vector<128x128xf32>
    %47 = tpu.matmul %46, %40, %cst_22 {dimension_numbers = #tpu.dot_dimension_numbers<[1], [0], [0], [1], [0, 0, 1, 1], [], []>} : vector<128x32xf32>, vector<32x128xf32>, vector<128x128xf32> -> vector<128x128xf32>
    %48 = arith.addf %45, %47 : vector<128x128xf32>
    %49 = math.tanh %48 : vector<128x128xf32>
    %50 = arith.mulf %49, %10 : vector<128x128xf32>
    %51 = arith.addf %50, %15 : vector<128x128xf32>
    %52 = vector.extract_strided_slice %51 {offsets = [0, 0], sizes = [32, 128], strides = [1, 1]} : vector<128x128xf32> to vector<32x128xf32>
    %53 = vector.extract_strided_slice %51 {offsets = [32, 0], sizes = [32, 128], strides = [1, 1]} : vector<128x128xf32> to vector<32x128xf32>
    %54 = vector.extract_strided_slice %51 {offsets = [64, 0], sizes = [32, 128], strides = [1, 1]} : vector<128x128xf32> to vector<32x128xf32>
    %55 = vector.extract_strided_slice %51 {offsets = [96, 0], sizes = [32, 128], strides = [1, 1]} : vector<128x128xf32> to vector<32x128xf32>
    %56 = arith.mulf %53, %38 : vector<32x128xf32>
    %57 = arith.mulf %52, %54 : vector<32x128xf32>
    %58 = arith.addf %56, %57 : vector<32x128xf32>
    %59 = math.tanh %58 : vector<32x128xf32>
    %60 = arith.mulf %55, %59 : vector<32x128xf32>
    %c0_23 = arith.constant 0 : index
    %c0_24 = arith.constant 0 : index
    %61 = vector.load %arg2[%c0_23, %c0_24] : memref<128x16xbf16, #tpu.memory_space<vmem>>, vector<128x16xbf16>
    %c2 = arith.constant 2 : index
    %c0_25 = arith.constant 0 : index
    %c0_26 = arith.constant 0 : index
    %62 = vector.load %arg1[%c2, %c0_25, %c0_26] : memref<5x16x128xbf16, #tpu.memory_space<vmem>>, vector<1x16x128xbf16>
    %63 = vector.shape_cast %62 : vector<1x16x128xbf16> to vector<16x128xbf16>
    %cst_27 = arith.constant dense<0.000000e+00> : vector<128x128xf32>
    %64 = tpu.matmul %61, %63, %cst_27 {dimension_numbers = #tpu.dot_dimension_numbers<[1], [0], [0], [1], [0, 0, 1, 1], [], []>} : vector<128x16xbf16>, vector<16x128xbf16>, vector<128x128xf32> -> vector<128x128xf32>
    %65 = arith.addf %64, %18 : vector<128x128xf32>
    %c0_28 = arith.constant 0 : index
    %c0_29 = arith.constant 0 : index
    %66 = vector.load %arg3[%c0_28, %c0_29] : memref<128x32xf32, #tpu.memory_space<vmem>>, vector<128x32xf32>
    %cst_30 = arith.constant dense<0.000000e+00> : vector<128x128xf32>
    %67 = tpu.matmul %66, %60, %cst_30 {dimension_numbers = #tpu.dot_dimension_numbers<[1], [0], [0], [1], [0, 0, 1, 1], [], []>} : vector<128x32xf32>, vector<32x128xf32>, vector<128x128xf32> -> vector<128x128xf32>
    %68 = arith.addf %65, %67 : vector<128x128xf32>
    %69 = math.tanh %68 : vector<128x128xf32>
    %70 = arith.mulf %69, %10 : vector<128x128xf32>
    %71 = arith.addf %70, %15 : vector<128x128xf32>
    %72 = vector.extract_strided_slice %71 {offsets = [0, 0], sizes = [32, 128], strides = [1, 1]} : vector<128x128xf32> to vector<32x128xf32>
    %73 = vector.extract_strided_slice %71 {offsets = [32, 0], sizes = [32, 128], strides = [1, 1]} : vector<128x128xf32> to vector<32x128xf32>
    %74 = vector.extract_strided_slice %71 {offsets = [64, 0], sizes = [32, 128], strides = [1, 1]} : vector<128x128xf32> to vector<32x128xf32>
    %75 = vector.extract_strided_slice %71 {offsets = [96, 0], sizes = [32, 128], strides = [1, 1]} : vector<128x128xf32> to vector<32x128xf32>
    %76 = arith.mulf %73, %58 : vector<32x128xf32>
    %77 = arith.mulf %72, %74 : vector<32x128xf32>
    %78 = arith.addf %76, %77 : vector<32x128xf32>
    %79 = math.tanh %78 : vector<32x128xf32>
    %80 = arith.mulf %75, %79 : vector<32x128xf32>
    %c0_31 = arith.constant 0 : index
    %c0_32 = arith.constant 0 : index
    %81 = vector.load %arg2[%c0_31, %c0_32] : memref<128x16xbf16, #tpu.memory_space<vmem>>, vector<128x16xbf16>
    %c3 = arith.constant 3 : index
    %c0_33 = arith.constant 0 : index
    %c0_34 = arith.constant 0 : index
    %82 = vector.load %arg1[%c3, %c0_33, %c0_34] : memref<5x16x128xbf16, #tpu.memory_space<vmem>>, vector<1x16x128xbf16>
    %83 = vector.shape_cast %82 : vector<1x16x128xbf16> to vector<16x128xbf16>
    %cst_35 = arith.constant dense<0.000000e+00> : vector<128x128xf32>
    %84 = tpu.matmul %81, %83, %cst_35 {dimension_numbers = #tpu.dot_dimension_numbers<[1], [0], [0], [1], [0, 0, 1, 1], [], []>} : vector<128x16xbf16>, vector<16x128xbf16>, vector<128x128xf32> -> vector<128x128xf32>
    %85 = arith.addf %84, %18 : vector<128x128xf32>
    %c0_36 = arith.constant 0 : index
    %c0_37 = arith.constant 0 : index
    %86 = vector.load %arg3[%c0_36, %c0_37] : memref<128x32xf32, #tpu.memory_space<vmem>>, vector<128x32xf32>
    %cst_38 = arith.constant dense<0.000000e+00> : vector<128x128xf32>
    %87 = tpu.matmul %86, %80, %cst_38 {dimension_numbers = #tpu.dot_dimension_numbers<[1], [0], [0], [1], [0, 0, 1, 1], [], []>} : vector<128x32xf32>, vector<32x128xf32>, vector<128x128xf32> -> vector<128x128xf32>
    %88 = arith.addf %85, %87 : vector<128x128xf32>
    %89 = math.tanh %88 : vector<128x128xf32>
    %90 = arith.mulf %89, %10 : vector<128x128xf32>
    %91 = arith.addf %90, %15 : vector<128x128xf32>
    %92 = vector.extract_strided_slice %91 {offsets = [0, 0], sizes = [32, 128], strides = [1, 1]} : vector<128x128xf32> to vector<32x128xf32>
    %93 = vector.extract_strided_slice %91 {offsets = [32, 0], sizes = [32, 128], strides = [1, 1]} : vector<128x128xf32> to vector<32x128xf32>
    %94 = vector.extract_strided_slice %91 {offsets = [64, 0], sizes = [32, 128], strides = [1, 1]} : vector<128x128xf32> to vector<32x128xf32>
    %95 = vector.extract_strided_slice %91 {offsets = [96, 0], sizes = [32, 128], strides = [1, 1]} : vector<128x128xf32> to vector<32x128xf32>
    %96 = arith.mulf %93, %78 : vector<32x128xf32>
    %97 = arith.mulf %92, %94 : vector<32x128xf32>
    %98 = arith.addf %96, %97 : vector<32x128xf32>
    %99 = math.tanh %98 : vector<32x128xf32>
    %100 = arith.mulf %95, %99 : vector<32x128xf32>
    %c0_39 = arith.constant 0 : index
    %c0_40 = arith.constant 0 : index
    %101 = vector.load %arg2[%c0_39, %c0_40] : memref<128x16xbf16, #tpu.memory_space<vmem>>, vector<128x16xbf16>
    %c4 = arith.constant 4 : index
    %c0_41 = arith.constant 0 : index
    %c0_42 = arith.constant 0 : index
    %102 = vector.load %arg1[%c4, %c0_41, %c0_42] : memref<5x16x128xbf16, #tpu.memory_space<vmem>>, vector<1x16x128xbf16>
    %103 = vector.shape_cast %102 : vector<1x16x128xbf16> to vector<16x128xbf16>
    %cst_43 = arith.constant dense<0.000000e+00> : vector<128x128xf32>
    %104 = tpu.matmul %101, %103, %cst_43 {dimension_numbers = #tpu.dot_dimension_numbers<[1], [0], [0], [1], [0, 0, 1, 1], [], []>} : vector<128x16xbf16>, vector<16x128xbf16>, vector<128x128xf32> -> vector<128x128xf32>
    %105 = arith.addf %104, %18 : vector<128x128xf32>
    %c0_44 = arith.constant 0 : index
    %c0_45 = arith.constant 0 : index
    %106 = vector.load %arg3[%c0_44, %c0_45] : memref<128x32xf32, #tpu.memory_space<vmem>>, vector<128x32xf32>
    %cst_46 = arith.constant dense<0.000000e+00> : vector<128x128xf32>
    %107 = tpu.matmul %106, %100, %cst_46 {dimension_numbers = #tpu.dot_dimension_numbers<[1], [0], [0], [1], [0, 0, 1, 1], [], []>} : vector<128x32xf32>, vector<32x128xf32>, vector<128x128xf32> -> vector<128x128xf32>
    %108 = arith.addf %105, %107 : vector<128x128xf32>
    %109 = math.tanh %108 : vector<128x128xf32>
    %110 = arith.mulf %109, %10 : vector<128x128xf32>
    %111 = arith.addf %110, %15 : vector<128x128xf32>
    %112 = vector.extract_strided_slice %111 {offsets = [0, 0], sizes = [32, 128], strides = [1, 1]} : vector<128x128xf32> to vector<32x128xf32>
    %113 = vector.extract_strided_slice %111 {offsets = [32, 0], sizes = [32, 128], strides = [1, 1]} : vector<128x128xf32> to vector<32x128xf32>
    %114 = vector.extract_strided_slice %111 {offsets = [64, 0], sizes = [32, 128], strides = [1, 1]} : vector<128x128xf32> to vector<32x128xf32>
    %115 = vector.extract_strided_slice %111 {offsets = [96, 0], sizes = [32, 128], strides = [1, 1]} : vector<128x128xf32> to vector<32x128xf32>
    %116 = arith.mulf %113, %98 : vector<32x128xf32>
    %117 = arith.mulf %112, %114 : vector<32x128xf32>
    %118 = arith.addf %116, %117 : vector<32x128xf32>
    %119 = math.tanh %118 : vector<32x128xf32>
    %120 = arith.mulf %115, %119 : vector<32x128xf32>
    %c0_47 = arith.constant 0 : index
    %c0_48 = arith.constant 0 : index
    %121 = vector.load %arg5[%c0_47, %c0_48] : memref<8x32xf32, #tpu.memory_space<vmem>>, vector<8x32xf32>
    %cst_49 = arith.constant dense<0.000000e+00> : vector<8x128xf32>
    %122 = tpu.matmul %121, %120, %cst_49 {dimension_numbers = #tpu.dot_dimension_numbers<[1], [0], [0], [1], [0, 0, 1, 1], [], []>} : vector<8x32xf32>, vector<32x128xf32>, vector<8x128xf32> -> vector<8x128xf32>
    %c0_50 = arith.constant 0 : index
    %c0_51 = arith.constant 0 : index
    %123 = vector.load %arg6[%c0_50, %c0_51] : memref<8x1xf32, #tpu.memory_space<vmem>>, vector<8x1xf32>
    %124 = vector.broadcast %123 : vector<8x1xf32> to vector<8x128xf32>
    %125 = arith.addf %122, %124 : vector<8x128xf32>
    %cst_52 = arith.constant dense<0xFF800000> : vector<128xf32>
    %126 = vector.multi_reduction <maximumf>, %125, %cst_52 [0] : vector<8x128xf32> to vector<128xf32>
    %127 = vector.shape_cast %126 : vector<128xf32> to vector<1x128xf32>
    %128 = vector.broadcast %127 : vector<1x128xf32> to vector<8x128xf32>
    %129 = arith.subf %125, %128 : vector<8x128xf32>
    %130 = math.exp %129 : vector<8x128xf32>
    %cst_53 = arith.constant dense<0.000000e+00> : vector<128xf32>
    %131 = vector.multi_reduction <add>, %130, %cst_53 [0] : vector<8x128xf32> to vector<128xf32>
    %132 = vector.shape_cast %131 : vector<128xf32> to vector<1x128xf32>
    %133 = tpu.reciprocal %132 {approx = true} : vector<1x128xf32> -> vector<1x128xf32>
    %134 = vector.broadcast %133 : vector<1x128xf32> to vector<8x128xf32>
    %135 = arith.mulf %130, %134 : vector<8x128xf32>
    %c0_54 = arith.constant 0 : index
    %c0_55 = arith.constant 0 : index
    %136 = vector.load %arg7[%c0_54, %c0_55] : memref<8x128xf32, #tpu.memory_space<vmem>>, vector<8x128xf32>
    tpu.vector_store %arg7[%c0_54, %c0_55], %135 {strides = array<i32>} : memref<8x128xf32, #tpu.memory_space<vmem>>, vector<8x128xf32>,
    return
  }
  func.func @transform_0(%arg0: i32) -> (i32, i32, i32) {
    %c0_i32 = arith.constant 0 : i32
    %c0_i32_0 = arith.constant 0 : i32
    %c0_i32_1 = arith.constant 0 : i32
    return %c0_i32, %c0_i32_0, %arg0 : i32, i32, i32
  }
  func.func @transform_1(%arg0: i32) -> (i32, i32) {
    %c0_i32 = arith.constant 0 : i32
    %c0_i32_0 = arith.constant 0 : i32
    %c0_i32_1 = arith.constant 0 : i32
    return %c0_i32, %c0_i32_0 : i32, i32
  }
  func.func @transform_2(%arg0: i32) -> (i32, i32) {
    %c0_i32 = arith.constant 0 : i32
    %c0_i32_0 = arith.constant 0 : i32
    %c0_i32_1 = arith.constant 0 : i32
    return %c0_i32, %c0_i32_0 : i32, i32
  }
  func.func @transform_3(%arg0: i32) -> (i32, i32) {
    %c0_i32 = arith.constant 0 : i32
    %c0_i32_0 = arith.constant 0 : i32
    %c0_i32_1 = arith.constant 0 : i32
    return %c0_i32, %c0_i32_0 : i32, i32
  }
  func.func @transform_4(%arg0: i32) -> (i32, i32) {
    %c0_i32 = arith.constant 0 : i32
    %c0_i32_0 = arith.constant 0 : i32
    %c0_i32_1 = arith.constant 0 : i32
    return %c0_i32, %c0_i32_0 : i32, i32
  }
  func.func @transform_5(%arg0: i32) -> (i32, i32) {
    %c0_i32 = arith.constant 0 : i32
    %c0_i32_0 = arith.constant 0 : i32
    %c0_i32_1 = arith.constant 0 : i32
    return %c0_i32, %c0_i32_0 : i32, i32
  }
  func.func @transform_6(%arg0: i32) -> (i32, i32) {
    %c0_i32 = arith.constant 0 : i32
    %c0_i32_0 = arith.constant 0 : i32
    return %c0_i32, %arg0 : i32, i32
  }
}

</mosaic_0001>

<bundles_post_ra>
// kernel: tpu_custom_call.1
= control target key start
LH: loop header
LB: loop body
LE: loop exit
PB: predicated region body
PF: predicated region fallthrough
CT: control target
= control target key end

     0   :  { %vm420_vm0 = vcmask 261120   ;;  %v3938_v2 = vmov 0.0   ;;  %vm282_vm1 = vcmask 130048   ;;  %v2997_v10 = vmov 0   ;;  %s3931_s0 = inlined_call_operand.vmem [shape: bf16[5,16,128], index: 0, kind: input, shape index: {}]   ;;  %s3932_s1 = inlined_call_operand.vmem [shape: bf16[128,16], index: 1, kind: input, shape index: {}]   ;;  %s3933_s2 = inlined_call_operand.vmem [shape: f32[128,32], index: 2, kind: input, shape index: {}]   ;;  %s3934_s3 = inlined_call_operand.vmem [shape: f32[128,1], index: 3, kind: input, shape index: {}]   ;;  %s3935_s4 = inlined_call_operand.vmem [shape: f32[8,32], index: 4, kind: input, shape index: {}]   ;;  %s3936_s5 = inlined_call_operand.vmem [shape: f32[8,1], index: 5, kind: input, shape index: {}]   ;;  %s3937_s6 = inlined_call_operand.hbm [shape: f32[8,128], index: 6, kind: output, shape index: {}]  }
   0x1   :  { %v3039_v0 = vld [vmem:[%s3933_s2] sm:$0xff]  ;;  %2457 = vmatprep.subr.mxu1 %v3938_v2  ;;  %v3050_v3 = vld [vmem:[%s3933_s2 + $0x8] sm:$0xff]  ;;  %v3061_v5 = vld [vmem:[%s3933_s2 + $0x10] sm:$0xff]  ;;  %2737 = vset.pattern.permute.xlu0 %v2997_v10 }
   0x2   :  { %v2739_v1 = vld [vmem:[%s3931_s0] sm:$0xff]   ;;  %2459 = vmatprep.mubr.msk.f32.mxu1 %vm420_vm0, %v3039_v0  ;;  %2458 = vmatpush3.msra.mxu1 %v3938_v2  ;;  %v3068_v6 = vld [vmem:[%s3932_s1 + $0x8] sm:$0xff]   ;;  %v3077_v7 = vld [vmem:[%s3933_s2 + $0x18] sm:$0xff] }
   0x3   :  { %2439 = vmatprep.subr.bf16.mxu0 %v2739_v1  ;;  %v3056_v4 = vld [vmem:[%s3932_s1] sm:$0xff]   ;;  %2460 = vmatmul.mubr.msk.f32.vlgmr.msra.gmra.mrb[0].mxu1 %vm420_vm0, %v3050_v3  ;;  %v3087_v9 = vld [vmem:[%s3932_s1 + $0x10] sm:$0xff]   ;;  %v3100_v11 = vld [vmem:[%s3933_s2 + $0x28] sm:$0xff] }
   0x4   :  { %2440 = vmatpush3.bf16.msra.mxu0 %v2739_v1  ;;  %2441 = vmatprep.mubr.msk.bf16.mxu0 %vm282_vm1, %v3056_v4  ;;  %v3082_v8 = vld [vmem:[%s3933_s2 + $0x20] sm:$0xff]  ;;  %v3105_v12 = vld [vmem:[%s3933_s2 + $0x30] sm:$0xff]  ;;  %v3110_v13 = vld [vmem:[%s3932_s1 + $0x18] sm:$0xff]  }
   0x5   :  { %2462 = vmatprep.mubr.msk.f32.mxu1 %vm420_vm0, %v3061_v5  ;;  %2738 = vset.pattern.permute.xlu1 %v2997_v10  ;;  %v3117_v14 = vld [vmem:[%s3932_s1 + $0x20] sm:$0xff]   ;;  %v3124_v15 = vld [vmem:[%s3933_s2 + $0x38] sm:$0xff]  ;;  %v3136_v17 = vld [vmem:[%s3933_s2 + $0x48] sm:$0xff] }
   0x6   :  { %v3129_v16 = vld [vmem:[%s3933_s2 + $0x40] sm:$0xff]  ;;  %v2748_v18 = vld [vmem:[%s3931_s0 + $0x8] sm:$0xff]   ;;  %v2749_v20 = vld [vmem:[%s3931_s0 + $0x10] sm:$0xff]  }
   0x7   :  { %2442 = vmatmul.mubr.msk.bf16.vlgmr.msra.gmra.mrb[0].mxu0 %vm282_vm1, %v3068_v6  ;;  %2463 = vmatmul.mubr.msk.f32.gmra.mrb[2].mxu1 %vm420_vm0, %v3077_v7  ;;  %v122_v19 = vld [vmem:[%s3934_s3] sm:$0xff]  ;;  %v3159_v22 = vld [vmem:[%s3933_s2 + $0x50] sm:$0xff]  ;;  %v123_v23 = vld [vmem:[%s3934_s3 + $0x8] sm:$0xff] }
   0x8   :  { %2445 = vmatprep.mubr.msk.bf16.mxu0 %vm282_vm1, %v3087_v9  ;;  %2465 = vmatprep.mubr.msk.f32.mxu1 %vm420_vm0, %v3082_v8  ;;  %v126_v21 = vld [vmem:[%s3934_s3 + $0x20] sm:$0xff]  ;;  %v3167_v24 = vld [vmem:[%s3932_s1 + $0x28] sm:$0xff]   ;;  %v3177_v26 = vld [vmem:[%s3932_s1 + $0x30] sm:$0xff]  }
   0x9   :  { %140 = vperm.xlu0 %2737, %v122_v19   ;;  %2483 = vmatprep.subr.bf16.mxu1 %v2748_v18  ;;  %v127_v25 = vld [vmem:[%s3934_s3 + $0x28] sm:$0xff]  ;;  %v3184_v27 = vld [vmem:[%s3933_s2 + $0x58] sm:$0xff]  ;;  %v3189_v28 = vld [vmem:[%s3933_s2 + $0x60] sm:$0xff] }
   0xa   :  { %160 = vperm.xlu1 %2738, %v126_v21   ;;  %2484 = vmatpush3.bf16.msra.mxu1 %v2748_v18  ;;  %v124_v29 = vld [vmem:[%s3934_s3 + $0x10] sm:$0xff]  ;;  %v125_v30 = vld [vmem:[%s3934_s3 + $0x18] sm:$0xff]  ;;  %v3208_v31 = vld [vmem:[%s3933_s2 + $0x68] sm:$0xff] }
   0xb   :  { %2466 = vmatmul.mubr.msk.f32.gmra.mrb[4].mxu1 %vm420_vm0, %v3100_v11  ;;  %2533 = vmatprep.subr.bf16.mxu1 %v2749_v20 }
   0xc   :  { %2468 = vmatprep.mubr.msk.f32.mxu1 %vm420_vm0, %v3105_v12 }
   0xd   :  { %145 = vperm.xlu0 %2737, %v123_v23  }
   0xe   :  { %165 = vperm.xlu1 %2738, %v127_v25  }
   0xf   :  { %2446 = vmatmul.mubr.msk.bf16.gmra.mrb[4].mxu0 %vm282_vm1, %v3110_v13  ;;  %2469 = vmatmul.mubr.msk.f32.gmra.mrb[6].mxu1 %vm420_vm0, %v3124_v15 }
  0x10   :  { %2449 = vmatprep.mubr.msk.bf16.mxu0 %vm282_vm1, %v3117_v14  ;;  %2471 = vmatprep.mubr.msk.f32.mxu1 %vm420_vm0, %v3129_v16 }
  0x11   :  { %150 = vperm.xlu0 %2737, %v124_v29  }
  0x13   :  { %2472 = vmatmul.mubr.msk.f32.gmra.mrb[8].mxu1 %vm420_vm0, %v3136_v17 }
  0x14   :  { %2474 = vmatprep.mubr.msk.f32.mxu1 %vm420_vm0, %v3159_v22 }
  0x17   :  { %2450 = vmatmul.mubr.msk.bf16.gmra.mrb[8].mxu0 %vm282_vm1, %v3167_v24  ;;  %2475 = vmatmul.mubr.msk.f32.gmra.mrb[10].mxu1 %vm420_vm0, %v3184_v27 }
  0x18   :  { %2453 = vmatprep.mubr.msk.bf16.mxu0 %vm282_vm1, %v3177_v26  ;;  %2477 = vmatprep.mubr.msk.f32.mxu1 %vm420_vm0, %v3189_v28 }
  0x19   :  { %11 = vsyncpa [#allocation3], 0  ;;  %v3213_v32 = vld [vmem:[%s3933_s2 + $0x70] sm:$0xff]  ;;  %155 = vperm.xlu1 %2738, %v125_v30   ;;  %v3221_v34 = vld [vmem:[%s3932_s1 + $0x38] sm:$0xff]   ;;  %vm2999_vm2 = vmmov 0  }
  0x1a   :  { %v128_v33 = vld [vmem:[%s3934_s3 + $0x30] sm:$0xff]  ;;  %v129_v35 = vld [vmem:[%s3934_s3 + $0x38] sm:$0xff]  ;;  %v130_v37 = vld [vmem:[%s3934_s3 + $0x40] sm:$0xff] }
  0x1b   :  { %2478 = vmatmul.mubr.msk.f32.gmra.mrb[12].mxu1 %vm420_vm0, %v3208_v31  ;;  %v3233_v36 = vld [vmem:[%s3933_s2 + $0x78] sm:$0xff]  ;;  %170 = vperm.xlu0 %2737, %v128_v33   ;;  %v131_v38 = vld [vmem:[%s3934_s3 + $0x48] sm:$0xff]  ;;  %v132_v39 = vld [vmem:[%s3934_s3 + $0x50] sm:$0xff] }
  0x1c   :  { %2480 = vmatprep.mubr.msk.f32.mxu1 %vm420_vm0, %v3213_v32  ;;  %v133_v40 = vld [vmem:[%s3934_s3 + $0x58] sm:$0xff]  ;;  %v134_v42 = vld [vmem:[%s3934_s3 + $0x60] sm:$0xff]  ;;  %v135_v43 = vld [vmem:[%s3934_s3 + $0x68] sm:$0xff] }
  0x1d   :  { %175 = vperm.xlu1 %2738, %v129_v35   ;;  %v2750_v41 = vld [vmem:[%s3931_s0 + $0x18] sm:$0xff]   ;;  %v136_v44 = vld [vmem:[%s3934_s3 + $0x70] sm:$0xff]  ;;  %v2039_v46 = vld [vmem:[%s3936_s5] sm:$0xff] }
  0x1e   :  { %v137_v45 = vld [vmem:[%s3934_s3 + $0x78] sm:$0xff]  ;;  %v2751_v47 = vld [vmem:[%s3931_s0 + $0x20] sm:$0xff]  }
  0x1f   :  { %2454 = vmatmul.mubr.msk.bf16.gmra.mrb[12].mxu0 %vm282_vm1, %v3221_v34  ;;  %2481 = vmatmul.mubr.msk.f32.gmra.mrb[14].mxu1 %vm420_vm0, %v3233_v36 }
  0x20   :  { %2509 = vmatprep.mubr.msk.f32.mxu0 %vm420_vm0, %v3039_v0  ;;  %2485 = vmatprep.mubr.msk.bf16.mxu1 %vm282_vm1, %v3056_v4 }
  0x21   :  { %180 = vperm.xlu0 %2737, %v130_v37   ;;  %185 = vperm.xlu1 %2738, %v131_v38  }
  0x23   :  { %2486 = vmatmul.mubr.msk.bf16.vlgmr.msra.gmra.mrb[16].mxu1 %vm282_vm1, %v3068_v6 }
  0x24   :  { %2489 = vmatprep.mubr.msk.bf16.mxu1 %vm282_vm1, %v3087_v9  ;;  %2534 = vmatpush3.bf16.msra.mxu1 %v2749_v20 }
  0x25   :  { %190 = vperm.xlu0 %2737, %v132_v39   ;;  %195 = vperm.xlu1 %2738, %v133_v40  }
  0x26   :  { %2583 = vmatprep.subr.bf16.mxu1 %v2750_v41 }
  0x29   :  { %200 = vperm.xlu0 %2737, %v134_v42   ;;  %205 = vperm.xlu1 %2738, %v135_v43  }
  0x2b   :  { %2490 = vmatmul.mubr.msk.bf16.gmra.mrb[20].mxu1 %vm282_vm1, %v3110_v13 }
  0x2c   :  { %2493 = vmatprep.mubr.msk.bf16.mxu1 %vm282_vm1, %v3117_v14 }
  0x2d   :  { %210 = vperm.xlu0 %2737, %v136_v44   ;;  %215 = vperm.xlu1 %2738, %v137_v45  }
  0x31   :  { %2042 = vperm.xlu0 %2737, %v2039_v46  }
  0x33   :  { %2494 = vmatmul.mubr.msk.bf16.gmra.mrb[24].mxu1 %vm282_vm1, %v3167_v24 }
  0x34   :  { %2497 = vmatprep.mubr.msk.bf16.mxu1 %vm282_vm1, %v3177_v26 }
  0x3b   :  { %2498 = vmatmul.mubr.msk.bf16.gmra.mrb[28].mxu1 %vm282_vm1, %v3221_v34 }
  0x3c   :  { %2535 = vmatprep.mubr.msk.bf16.mxu1 %vm282_vm1, %v3056_v4 }
  0x43   :  { %2536 = vmatmul.mubr.msk.bf16.vlgmr.msra.gmra.mrb[32].mxu1 %vm282_vm1, %v3068_v6 }
  0x44   :  { %2539 = vmatprep.mubr.msk.bf16.mxu1 %vm282_vm1, %v3087_v9  ;;  %2584 = vmatpush3.bf16.msra.mxu1 %v2750_v41 }
  0x45   :  { %2633 = vmatprep.subr.bf16.mxu1 %v2751_v47 }
  0x4b   :  { %2540 = vmatmul.mubr.msk.bf16.gmra.mrb[36].mxu1 %vm282_vm1, %v3110_v13 }
  0x4c   :  { %2543 = vmatprep.mubr.msk.bf16.mxu1 %vm282_vm1, %v3117_v14 }
  0x53   :  { %2544 = vmatmul.mubr.msk.bf16.gmra.mrb[40].mxu1 %vm282_vm1, %v3167_v24 }
  0x54   :  { %2547 = vmatprep.mubr.msk.bf16.mxu1 %vm282_vm1, %v3177_v26 }
  0x5b   :  { %2548 = vmatmul.mubr.msk.bf16.gmra.mrb[44].mxu1 %vm282_vm1, %v3221_v34 }
  0x5c   :  { %2585 = vmatprep.mubr.msk.bf16.mxu1 %vm282_vm1, %v3056_v4 }
  0x63   :  { %2586 = vmatmul.mubr.msk.bf16.vlgmr.msra.gmra.mrb[48].mxu1 %vm282_vm1, %v3068_v6 }
  0x64   :  { %2589 = vmatprep.mubr.msk.bf16.mxu1 %vm282_vm1, %v3087_v9  ;;  %2634 = vmatpush3.bf16.msra.mxu1 %v2751_v47 }
  0x6b   :  { %2590 = vmatmul.mubr.msk.bf16.gmra.mrb[52].mxu1 %vm282_vm1, %v3110_v13 }
  0x6c   :  { %2593 = vmatprep.mubr.msk.bf16.mxu1 %vm282_vm1, %v3117_v14 }
  0x73   :  { %2594 = vmatmul.mubr.msk.bf16.gmra.mrb[56].mxu1 %vm282_vm1, %v3167_v24 }
  0x74   :  { %2597 = vmatprep.mubr.msk.bf16.mxu1 %vm282_vm1, %v3177_v26 }
  0x7b   :  { %2598 = vmatmul.mubr.msk.bf16.gmra.mrb[60].mxu1 %vm282_vm1, %v3221_v34 }
  0x7c   :  { %2635 = vmatprep.mubr.msk.bf16.mxu1 %vm282_vm1, %v3056_v4 }
  0x83   :  { %2636 = vmatmul.mubr.msk.bf16.vlgmr.msra.gmra.mrb[64].mxu1 %vm282_vm1, %v3068_v6 }
  0x84   :  { %2639 = vmatprep.mubr.msk.bf16.mxu1 %vm282_vm1, %v3087_v9 }
  0x88   :  { %v3338_v48 = vpop.permute.xlu0 %140 }
  0x89   :  { %v3340_v49 = vpop.permute.xlu1 %160 }
  0x8b   :  { %2640 = vmatmul.mubr.msk.bf16.gmra.mrb[68].mxu1 %vm282_vm1, %v3110_v13 }
  0x8c   :  { %2643 = vmatprep.mubr.msk.bf16.mxu1 %vm282_vm1, %v3117_v14  ;;  %v3342_v50 = vpop.permute.xlu0 %145 }
  0x8d   :  { %v3344_v51 = vpop.permute.xlu1 %165 }
  0x90   :  { %v3346_v52 = vpop.permute.xlu0 %150 }
  0x93   :  { %2644 = vmatmul.mubr.msk.bf16.gmra.mrb[72].mxu1 %vm282_vm1, %v3167_v24 }
  0x94   :  { %2647 = vmatprep.mubr.msk.bf16.mxu1 %vm282_vm1, %v3177_v26 }
  0x98   :  { %v3348_v53 = vpop.permute.xlu1 %155 }
  0x9a   :  { %v3350_v54 = vpop.permute.xlu0 %170 }
  0x9b   :  { %2648 = vmatmul.mubr.msk.bf16.gmra.mrb[76].mxu1 %vm282_vm1, %v3221_v34 }
  0x9c   :  { %v3352_v55 = vpop.permute.xlu1 %175 }
  0xa0   :  { %v3354_v58 = vpop.permute.xlu0 %180  ;;  %v3356_v59 = vpop.permute.xlu1 %185 }
  0xa4   :  { %v3362_v24 = vpop.permute.xlu0 %190  ;;  %v3364_v25 = vpop.permute.xlu1 %195 }
  0xa8   :  { %v3370_v47 = vpop.permute.xlu0 %200 }
  0xd6   :  { %v2461_v56 = vpop.f32.mrb[0].mxu1 }
  0xd7   :  { %v535_v57 = vpop.f32.mrb[1].mxu1 }
  0xda   :  { %v2443_v60 = vpop.f32.mrb[0].mxu0  ;;  %v2464_v63 = vpop.f32.mrb[2].mxu1 }
  0xdb   :  { %v350_v61 = vadd.f32 %v2443_v60, %v3346_v52  ;;  %v341_v62 = vpop.f32.mrb[1].mxu0  ;;  %v545_v6 = vpop.f32.mrb[3].mxu1 }
  0xdc   :  { %v342_v1 = vadd.f32 %v341_v62, %v3338_v48  ;;  %v2444_v4 = vpop.f32.mrb[2].mxu0 }
  0xdd   :  { %v353_v9 = vadd.f32 %v2444_v4, %v3348_v53  ;;  %v616_v10 = vadd.f32 %v545_v6, %v350_v61  ;;  %v344_v13 = vpop.f32.mrb[3].mxu0 }
  0xde   :  { %v614_v14 = vadd.f32 %v535_v57, %v342_v1  ;;  %v345_v18 = vadd.f32 %v344_v13, %v3342_v50  ;;  %v2467_v20 = vpop.f32.mrb[4].mxu1 }
  0xdf   :  { %v617_v19 = vadd.f32 %v2464_v63, %v353_v9  ;;  %v555_v23 = vpop.f32.mrb[5].mxu1  ;;  %2752 = vtanh.f32 %v616_v10 }
  0xe0   :  { %v615_v21 = vadd.f32 %v2461_v56, %v345_v18  ;;  %2754 = vtanh.f32 %v614_v14  ;;  %v3372_v56 = vpop.permute.xlu1 %205 }
  0xe1   :  { %2756 = vtanh.f32 %v617_v19 }
  0xe2   :  { %v2447_v26 = vpop.f32.mrb[4].mxu0  ;;  %v2470_v33 = vpop.f32.mrb[6].mxu1  ;;  %2758 = vtanh.f32 %v615_v21 }
  0xe3   :  { %v366_v29 = vadd.f32 %v2447_v26, %v3350_v54  ;;  %v357_v30 = vpop.f32.mrb[5].mxu0  ;;  %v565_v37 = vpop.f32.mrb[7].mxu1 }
  0xe4   :  { %v358_v34 = vadd.f32 %v357_v30, %v3340_v49  ;;  %v2448_v35 = vpop.f32.mrb[6].mxu0 }
  0xe5   :  { %v369_v38 = vadd.f32 %v2448_v35, %v3352_v55  ;;  %v620_v39 = vadd.f32 %v565_v37, %v366_v29  ;;  %v360_v40 = vpop.f32.mrb[7].mxu0  ;;  %v3380_v37 = vpop.permute.xlu1 %215 }
  0xe6   :  { %v618_v41 = vadd.f32 %v555_v23, %v358_v34  ;;  %v361_v42 = vadd.f32 %v360_v40, %v3344_v51  ;;  %v2473_v44 = vpop.f32.mrb[8].mxu1  ;;  %v3378_v34 = vpop.permute.xlu0 %210  ;;  %3945 = vst [vmem:[#allocation5_spill] sm:$0xff] %v3380_v37 }
  0xe7   :  { %v621_v43 = vadd.f32 %v2470_v33, %v369_v38  ;;  %2760 = vtanh.f32 %v620_v39  ;;  %v575_v46 = vpop.f32.mrb[9].mxu1 }
  0xe8   :  { %2762 = vtanh.f32 %v618_v41  ;;  %v619_v45 = vadd.f32 %v2467_v20, %v361_v42 }
  0xe9   :  { %2764 = vtanh.f32 %v621_v43  ;;  %v2753_v6 = vpop.eup %2752 }
  0xea   :  { %2766 = vtanh.f32 %v619_v45  ;;  %v2451_v57 = vpop.f32.mrb[8].mxu0  ;;  %v2476_v62 = vpop.f32.mrb[10].mxu1 }
  0xeb   :  { %v382_v60 = vadd.f32 %v2451_v57, %v3362_v24  ;;  %v373_v61 = vpop.f32.mrb[9].mxu0  ;;  %v585_v4 = vpop.f32.mrb[11].mxu1  ;;  %v648_v57 = vmul.f32 0.5, %v2753_v6 }
  0xec   :  { %v374_v63 = vadd.f32 %v373_v61, %v3354_v58  ;;  %v2452_v1 = vpop.f32.mrb[10].mxu0  ;;  %v2755_v14 = vpop.eup %2754 }
  0xed   :  { %v385_v9 = vadd.f32 %v2452_v1, %v3364_v25  ;;  %v624_v10 = vadd.f32 %v585_v4, %v382_v60  ;;  %v376_v13 = vpop.f32.mrb[11].mxu0  ;;  %v2757_v20 = vpop.eup %2756 }
  0xee   :  { %v622_v18 = vadd.f32 %v575_v46, %v374_v63  ;;  %v377_v19 = vadd.f32 %v376_v13, %v3356_v59  ;;  %v2479_v23 = vpop.f32.mrb[12].mxu1  ;;  %v2759_v26 = vpop.eup %2758  ;;  %v646_v63 = vmul.f32 0.5, %v2755_v14  ;;  %v649_v13 = vmul.f32 0.5, %v2757_v20 }
  0xef   :  { %v625_v21 = vadd.f32 %v2476_v62, %v385_v9  ;;  %2768 = vtanh.f32 %v624_v10  ;;  %v595_v30 = vpop.f32.mrb[13].mxu1 }
  0xf0   :  { %2770 = vtanh.f32 %v622_v18  ;;  %v623_v29 = vadd.f32 %v2473_v44, %v377_v19 }
  0xf1   :  { %v2761_v33 = vpop.eup %2760  ;;  %2772 = vtanh.f32 %v625_v21 }
  0xf2   :  { %v2763_v35 = vpop.eup %2762  ;;  %v652_v38 = vmul.f32 0.5, %v2761_v33  ;;  %2774 = vtanh.f32 %v623_v29  ;;  %v2455_v39 = vpop.f32.mrb[12].mxu0  ;;  %v647_v29 = vmul.f32 0.5, %v2759_v26 }
  0xf3   :  { %v2765_v40 = vpop.eup %2764  ;;  %v650_v41 = vmul.f32 0.5, %v2763_v35  ;;  %v398_v42 = vadd.f32 %v2455_v39, %v3378_v34  ;;  %v389_v43 = vpop.f32.mrb[13].mxu0  ;;  %v664_v39 = vadd.f32 0.5, %v648_v57 }
  0xf4   :  { %v2482_v45 = vpop.f32.mrb[14].mxu1  ;;  %v2767_v46 = vpop.eup %2766  ;;  %v653_v44 = vmul.f32 0.5, %v2765_v40  ;;  %v390_v60 = vadd.f32 %v389_v43, %v3370_v47  ;;  %v668_v18 = vadd.f32 0.5, %v652_v38  ;;  %v665_v38 = vadd.f32 0.5, %v649_v13 }
  0xf5   :  { %v2456_v61 = vpop.f32.mrb[14].mxu0  ;;  %v605_v62 = vpop.f32.mrb[15].mxu1  ;;  %v651_v1 = vmul.f32 0.5, %v2767_v46  ;;  %v666_v33 = vadd.f32 0.5, %v650_v41  ;;  %v663_v57 = vadd.f32 0.5, %v647_v29 }
  0xf6   :  { %v401_v4 = vadd.f32 %v2456_v61, %v3380_v37  ;;  %v628_v9 = vadd.f32 %v605_v62, %v398_v42  ;;  %v392_v10 = vpop.f32.mrb[15].mxu0  ;;  %v626_v19 = vadd.f32 %v595_v30, %v390_v60  ;;  %v3386_v6 = vpop.f32.mrb[16].mxu1  ;;  %v669_v40 = vadd.f32 0.5, %v653_v44 }
  0xf7   :  { %v393_v21 = vadd.f32 %v392_v10, %v3372_v56  ;;  %v3388_v43 = vpop.f32.mrb[17].mxu1  ;;  %v662_v42 = vadd.f32 0.5, %v646_v63  ;;  %v667_v61 = vadd.f32 0.5, %v651_v1  ;;  %v680_v26 = vmul.f32 0.0, %v668_v18 }
  0xf8   :  { %v629_v35 = vadd.f32 %v2482_v45, %v401_v4  ;;  %2776 = vtanh.f32 %v628_v9  ;;  %v3390_v20 = vpop.f32.mrb[18].mxu1  ;;  %v678_v44 = vmul.f32 0.0, %v666_v33  ;;  %v681_v4 = vmul.f32 0.0, %v669_v40 }
  0xf9   :  { %2778 = vtanh.f32 %v626_v19  ;;  %v627_v14 = vadd.f32 %v2479_v23, %v393_v21  ;;  %v2769_v46 = vpop.eup %2768  ;;  %v3392_v45 = vpop.f32.mrb[19].mxu1  ;;  %v679_v63 = vmul.f32 0.0, %v667_v61 }
  0xfa   :  { %2780 = vtanh.f32 %v629_v35  ;;  %v2771_v30 = vpop.eup %2770  ;;  %v684_v41 = vmul.f32 %v2769_v46, %v664_v39 }
  0xfb   :  { %2782 = vtanh.f32 %v627_v14  ;;  %v2773_v60 = vpop.eup %2772  ;;  %v682_v62 = vmul.f32 %v2771_v30, %v662_v42 }
  0xfc   :  { %v2775_v23 = vpop.eup %2774  ;;  %v685_v9 = vmul.f32 %v2773_v60, %v665_v38  ;;  %v3394_v10 = vadd.f32 %v684_v41, %v680_v26 }
  0xfd   :  { %v3396_v1 = vadd.f32 %v682_v62, %v678_v44  ;;  %v683_v19 = vmul.f32 %v2775_v23, %v663_v57 }
  0xfe   :  { %3946 = vst [vmem:[#allocation6_spill] sm:$0xff] %v3394_v10  ;;  %v3398_v21 = vadd.f32 %v685_v9, %v681_v4  ;;  %2784 = vtanh.f32 %v3394_v10  ;;  %v3403_v18 = vpop.f32.mrb[20].mxu1 }
  0xff   :  { %3947 = vst [vmem:[#allocation7_spill] sm:$0xff] %v3396_v1  ;;  %v3401_v13 = vadd.f32 %v683_v19, %v679_v63  ;;  %2786 = vtanh.f32 %v3396_v1  ;;  %v3406_v29 = vpop.f32.mrb[21].mxu1 }
 0x100   :  { %3948 = vst [vmem:[#allocation8_spill] sm:$0xff] %v3398_v21  ;;  %2788 = vtanh.f32 %v3398_v21  ;;  %v3409_v35 = vpop.f32.mrb[22].mxu1 }
 0x101   :  { %3949 = vst [vmem:[#allocation9_spill] sm:$0xff] %v3401_v13  ;;  %2790 = vtanh.f32 %v3401_v13  ;;  %v3412_v40 = vpop.f32.mrb[23].mxu1 }
 0x102   :  { %v2777_v33 = vpop.eup %2776 }
 0x103   :  { %v2779_v39 = vpop.eup %2778  ;;  %v660_v61 = vmul.f32 0.5, %v2777_v33 }
 0x104   :  { %v2781_v14 = vpop.eup %2780  ;;  %v658_v30 = vmul.f32 0.5, %v2779_v39 }
 0x105   :  { %v2783_v46 = vpop.eup %2782  ;;  %v661_v42 = vmul.f32 0.5, %v2781_v14  ;;  %v676_v62 = vadd.f32 0.5, %v660_v61 }
 0x106   :  { %v659_v38 = vmul.f32 0.5, %v2783_v46  ;;  %v3414_v26 = vpop.f32.mrb[24].mxu1  ;;  %v674_v9 = vadd.f32 0.5, %v658_v30 }
 0x107   :  { %v3416_v60 = vpop.f32.mrb[25].mxu1  ;;  %v677_v44 = vadd.f32 0.5, %v661_v42 }
 0x108   :  { %v2785_v41 = vpop.eup %2784  ;;  %v3418_v23 = vpop.f32.mrb[26].mxu1  ;;  %v675_v63 = vadd.f32 0.5, %v659_v38 }
 0x109   :  { %v2787_v57 = vpop.eup %2786  ;;  %v3420_v19 = vpop.f32.mrb[27].mxu1  ;;  %v696_v14 = vmul.f32 %v2785_v41, %v676_v62 }
 0x10a   :  { %v2789_v4 = vpop.eup %2788  ;;  %v694_v39 = vmul.f32 %v2787_v57, %v674_v9 }
 0x10b   :  { %v2791_v2 = vpop.eup %2790  ;;  %v697_v33 = vmul.f32 %v2789_v4, %v677_v44 }
 0x10c   :  { %v695_v46 = vmul.f32 %v2791_v2, %v675_v63 }
 0x10d   :  { %v2698_v10 = vpack.c.bf16 %v697_v33, %v696_v14 }
 0x10e   :  { %v2694_v21 = vpack.c.bf16 %v695_v46, %v694_v39  ;;  %v3422_v1 = vpop.f32.mrb[28].mxu1 }
 0x10f   :  { %v3424_v13 = vpop.f32.mrb[29].mxu1 }
 0x110   :  { %2695 = vmatprep.subr.bf16.mxu0 %v2694_v21  ;;  %v3426_v42 = vpop.f32.mrb[30].mxu1 }
 0x111   :  { %2697 = vmatpush3.bf16.msra.mxu0 %v2694_v21  ;;  %v3428_v61 = vpop.f32.mrb[31].mxu1 }
 0x112   :  { %2699 = vmatprep.subr.bf16.mxu0 %v2698_v10 }
 0x115   :  { %2701 = vmatpush3.bf16.msra.mxu0 %v2698_v10 }
 0x116   :  { %v3430_v30 = vpop.f32.mrb[32].mxu1 }
 0x117   :  { %v3432_v38 = vpop.f32.mrb[33].mxu1 }
 0x118   :  { %2510 = vmatmul.mubr.msk.f32.vlgmr.msra.gmra.mrb[16].mxu0 %vm420_vm0, %v3050_v3  ;;  %v3436_v2 = vpop.f32.mrb[34].mxu1 }
 0x119   :  { %2512 = vmatprep.mubr.msk.f32.mxu0 %vm420_vm0, %v3061_v5  ;;  %v3440_v41 = vpop.f32.mrb[35].mxu1 }
 0x11c   :  { %2513 = vmatmul.mubr.msk.f32.gmra.mrb[18].mxu0 %vm420_vm0, %v3077_v7 }
 0x11d   :  { %2515 = vmatprep.mubr.msk.f32.mxu0 %vm420_vm0, %v3082_v8 }
 0x11e   :  { %v3446_v10 = vpop.f32.mrb[36].mxu1 }
 0x11f   :  { %v3448_v21 = vpop.f32.mrb[37].mxu1 }
 0x120   :  { %2516 = vmatmul.mubr.msk.f32.gmra.mrb[20].mxu0 %vm420_vm0, %v3100_v11  ;;  %v3452_v3 = vpop.f32.mrb[38].mxu1 }
 0x121   :  { %2518 = vmatprep.mubr.msk.f32.mxu0 %vm420_vm0, %v3105_v12  ;;  %v3456_v5 = vpop.f32.mrb[39].mxu1 }
 0x124   :  { %2519 = vmatmul.mubr.msk.f32.gmra.mrb[22].mxu0 %vm420_vm0, %v3124_v15 }
 0x125   :  { %2521 = vmatprep.mubr.msk.f32.mxu0 %vm420_vm0, %v3129_v16 }
 0x126   :  { %v3462_v7 = vpop.f32.mrb[40].mxu1 }
 0x127   :  { %3950 = vst [vmem:[#allocation10_spill] sm:$0xff] %v3462_v7  ;;  %v3464_v8 = vpop.f32.mrb[41].mxu1 }
 0x128   :  { %3951 = vst [vmem:[#allocation11_spill] sm:$0xff] %v3464_v8  ;;  %2522 = vmatmul.mubr.msk.f32.gmra.mrb[24].mxu0 %vm420_vm0, %v3136_v17  ;;  %v3468_v11 = vpop.f32.mrb[42].mxu1 }
 0x129   :  { %3952 = vst [vmem:[#allocation12_spill] sm:$0xff] %v3468_v11  ;;  %2524 = vmatprep.mubr.msk.f32.mxu0 %vm420_vm0, %v3159_v22  ;;  %v3472_v57 = vpop.f32.mrb[43].mxu1 }
 0x12c   :  { %2525 = vmatmul.mubr.msk.f32.gmra.mrb[26].mxu0 %vm420_vm0, %v3184_v27 }
 0x12d   :  { %2527 = vmatprep.mubr.msk.f32.mxu0 %vm420_vm0, %v3189_v28 }
 0x12e   :  { %v3478_v44 = vpop.f32.mrb[44].mxu1 }
 0x12f   :  { %3953 = vst [vmem:[#allocation13_spill] sm:$0xff] %v3478_v44  ;;  %v3480_v62 = vpop.f32.mrb[45].mxu1 }
 0x130   :  { %3954 = vst [vmem:[#allocation14_spill] sm:$0xff] %v3480_v62  ;;  %2528 = vmatmul.mubr.msk.f32.gmra.mrb[28].mxu0 %vm420_vm0, %v3208_v31  ;;  %v3484_v4 = vpop.f32.mrb[46].mxu1 }
 0x131   :  { %3955 = vst [vmem:[#allocation15_spill] sm:$0xff] %v3484_v4  ;;  %2530 = vmatprep.mubr.msk.f32.mxu0 %vm420_vm0, %v3213_v32  ;;  %v3488_v9 = vpop.f32.mrb[47].mxu1 }
 0x132   :  { %3956 = vst [vmem:[#allocation16_spill] sm:$0xff] %v3488_v9 }
 0x134   :  { %2531 = vmatmul.mubr.msk.f32.gmra.mrb[30].mxu0 %vm420_vm0, %v3233_v36 }
 0x135   :  { %2559 = vmatprep.mubr.msk.f32.mxu0 %vm420_vm0, %v3039_v0 }
 0x136   :  { %v3494_v63 = vpop.f32.mrb[48].mxu1 }
 0x137   :  { %3957 = vst [vmem:[#allocation17_spill] sm:$0xff] %v3494_v63  ;;  %v3496_v14 = vpop.f32.mrb[49].mxu1 }
 0x138   :  { %3958 = vst [vmem:[#allocation18_spill] sm:$0xff] %v3496_v14  ;;  %v3498_v33 = vpop.f32.mrb[50].mxu1 }
 0x139   :  { %3959 = vst [vmem:[#allocation19_spill] sm:$0xff] %v3498_v33  ;;  %v3500_v39 = vpop.f32.mrb[51].mxu1 }
 0x13a   :  { %3960 = vst [vmem:[#allocation20_spill] sm:$0xff] %v3500_v39 }
 0x13e   :  { %v3502_v46 = vpop.f32.mrb[52].mxu1 }
 0x13f   :  { %3961 = vst [vmem:[#allocation21_spill] sm:$0xff] %v3502_v46  ;;  %v3504_v44 = vpop.f32.mrb[53].mxu1 }
 0x140   :  { %3962 = vst [vmem:[#allocation22_spill] sm:$0xff] %v3504_v44  ;;  %v3506_v4 = vpop.f32.mrb[54].mxu1 }
 0x141   :  { %3963 = vst [vmem:[#allocation23_spill] sm:$0xff] %v3506_v4  ;;  %v3508_v62 = vpop.f32.mrb[55].mxu1 }
 0x142   :  { %3964 = vst [vmem:[#allocation24_spill] sm:$0xff] %v3508_v62 }
 0x146   :  { %v3510_v9 = vpop.f32.mrb[56].mxu1 }
 0x147   :  { %3965 = vst [vmem:[#allocation25_spill] sm:$0xff] %v3510_v9  ;;  %v3512_v7 = vpop.f32.mrb[57].mxu1 }
 0x148   :  { %3966 = vst [vmem:[#allocation26_spill] sm:$0xff] %v3512_v7  ;;  %v3514_v0 = vpop.f32.mrb[58].mxu1 }
 0x149   :  { %3967 = vst [vmem:[#allocation27_spill] sm:$0xff] %v3514_v0  ;;  %v3516_v63 = vpop.f32.mrb[59].mxu1 }
 0x14a   :  { %3968 = vst [vmem:[#allocation28_spill] sm:$0xff] %v3516_v63 }
 0x14e   :  { %v3518_v14 = vpop.f32.mrb[60].mxu1 }
 0x14f   :  { %3969 = vst [vmem:[#allocation29_spill] sm:$0xff] %v3518_v14  ;;  %v3520_v33 = vpop.f32.mrb[61].mxu1 }
 0x150   :  { %3970 = vst [vmem:[#allocation30_spill] sm:$0xff] %v3520_v33  ;;  %v3522_v39 = vpop.f32.mrb[62].mxu1 }
 0x151   :  { %3971 = vst [vmem:[#allocation31_spill] sm:$0xff] %v3522_v39  ;;  %v3524_v46 = vpop.f32.mrb[63].mxu1 }
 0x152   :  { %3972 = vst [vmem:[#allocation32_spill] sm:$0xff] %v3524_v46 }
 0x156   :  { %v3526_v44 = vpop.f32.mrb[64].mxu1 }
 0x157   :  { %3973 = vst [vmem:[#allocation33_spill] sm:$0xff] %v3526_v44  ;;  %v3528_v4 = vpop.f32.mrb[65].mxu1 }
 0x158   :  { %3974 = vst [vmem:[#allocation34_spill] sm:$0xff] %v3528_v4  ;;  %v3530_v62 = vpop.f32.mrb[66].mxu1 }
 0x159   :  { %3975 = vst [vmem:[#allocation35_spill] sm:$0xff] %v3530_v62  ;;  %v3532_v9 = vpop.f32.mrb[67].mxu1 }
 0x15a   :  { %3976 = vst [vmem:[#allocation36_spill] sm:$0xff] %v3532_v9 }
 0x15e   :  { %v3534_v7 = vpop.f32.mrb[68].mxu1 }
 0x15f   :  { %3977 = vst [vmem:[#allocation37_spill] sm:$0xff] %v3534_v7  ;;  %v3536_v0 = vpop.f32.mrb[69].mxu1 }
 0x160   :  { %3978 = vst [vmem:[#allocation38_spill] sm:$0xff] %v3536_v0  ;;  %v3538_v63 = vpop.f32.mrb[70].mxu1 }
 0x161   :  { %3979 = vst [vmem:[#allocation39_spill] sm:$0xff] %v3538_v63  ;;  %v3540_v14 = vpop.f32.mrb[71].mxu1  ;;  %v745_v63 = vadd.f32 %v3392_v45, %v3342_v50  ;;  %v761_v45 = vadd.f32 %v3412_v40, %v3344_v51 }
 0x162   :  { %3980 = vst [vmem:[#allocation40_spill] sm:$0xff] %v3540_v14 }
 0x166   :  { %v3542_v33 = vpop.f32.mrb[72].mxu1 }
 0x167   :  { %3981 = vst [vmem:[#allocation41_spill] sm:$0xff] %v3542_v33  ;;  %v3544_v39 = vpop.f32.mrb[73].mxu1  ;;  %v742_v33 = vadd.f32 %v3388_v43, %v3338_v48  ;;  %v758_v43 = vadd.f32 %v3406_v29, %v3340_v49 }
 0x168   :  { %3982 = vst [vmem:[#allocation42_spill] sm:$0xff] %v3544_v39  ;;  %v3546_v46 = vpop.f32.mrb[74].mxu1 }
 0x169   :  { %3983 = vst [vmem:[#allocation43_spill] sm:$0xff] %v3546_v46  ;;  %v3548_v44 = vpop.f32.mrb[75].mxu1 }
 0x16a   :  { %3984 = vst [vmem:[#allocation44_spill] sm:$0xff] %v3548_v44  ;;  %v753_v44 = vadd.f32 %v3390_v20, %v3348_v53  ;;  %v769_v20 = vadd.f32 %v3409_v35, %v3352_v55 }
 0x16e   :  { %v3550_v4 = vpop.f32.mrb[76].mxu1 }
 0x16f   :  { %3985 = vst [vmem:[#allocation45_spill] sm:$0xff] %v3550_v4  ;;  %v3552_v62 = vpop.f32.mrb[77].mxu1  ;;  %v750_v4 = vadd.f32 %v3386_v6, %v3346_v52  ;;  %v766_v6 = vadd.f32 %v3403_v18, %v3350_v54 }
 0x170   :  { %3986 = vst [vmem:[#allocation46_spill] sm:$0xff] %v3552_v62  ;;  %v3554_v9 = vpop.f32.mrb[78].mxu1 }
 0x171   :  { %3987 = vst [vmem:[#allocation47_spill] sm:$0xff] %v3554_v9  ;;  %v3556_v7 = vpop.f32.mrb[79].mxu1 }
 0x172   :  { %3988 = vst [vmem:[#allocation48_spill] sm:$0xff] %v3556_v7 }
 0x1eb   :  { %v2511_v0 = vpop.f32.mrb[16].mxu0 }
 0x1ec   :  { %v950_v39 = vadd.f32 %v2511_v0, %v745_v63  ;;  %v870_v14 = vpop.f32.mrb[17].mxu0 }
 0x1ed   :  { %v949_v46 = vadd.f32 %v870_v14, %v742_v33 }
 0x1ee   :  { %2792 = vtanh.f32 %v950_v39 }
 0x1ef   :  { %v2514_v62 = vpop.f32.mrb[18].mxu0  ;;  %2794 = vtanh.f32 %v949_v46 }
 0x1f0   :  { %v952_v9 = vadd.f32 %v2514_v62, %v753_v44  ;;  %v880_v11 = vpop.f32.mrb[19].mxu0  ;;  %v774_v62 = vadd.f32 %v3416_v60, %v3354_v58 }
 0x1f1   :  { %v951_v7 = vadd.f32 %v880_v11, %v750_v4 }
 0x1f3   :  { %v2517_v8 = vpop.f32.mrb[20].mxu0 }
 0x1f4   :  { %v954_v63 = vadd.f32 %v2517_v8, %v761_v45  ;;  %v890_v14 = vpop.f32.mrb[21].mxu0  ;;  %v777_v8 = vadd.f32 %v3420_v19, %v3356_v59 }
 0x1f5   :  { %v953_v33 = vadd.f32 %v890_v14, %v758_v43 }
 0x1f6   :  { %2796 = vtanh.f32 %v954_v63 }
 0x1f7   :  { %2798 = vtanh.f32 %v953_v33  ;;  %v2520_v11 = vpop.f32.mrb[22].mxu0 }
 0x1f8   :  { %2800 = vtanh.f32 %v952_v9  ;;  %v956_v40 = vadd.f32 %v2520_v11, %v769_v20  ;;  %v900_v44 = vpop.f32.mrb[23].mxu0  ;;  %v2793_v18 = vpop.eup %2792  ;;  %v785_v9 = vadd.f32 %v3418_v23, %v3364_v25 }
 0x1f9   :  { %2802 = vtanh.f32 %v951_v7  ;;  %v955_v29 = vadd.f32 %v900_v44, %v766_v6  ;;  %v2795_v0 = vpop.eup %2794  ;;  %v782_v7 = vadd.f32 %v3414_v26, %v3362_v24  ;;  %v793_v6 = vadd.f32 %v3428_v61, %v3372_v56 }
 0x1fa   :  { %2804 = vtanh.f32 %v956_v40  ;;  %v790_v40 = vadd.f32 %v3424_v13, %v3370_v47  ;;  %v982_v44 = vmul.f32 0.5, %v2793_v18  ;;  %v801_v61 = vadd.f32 %v3426_v42, %v3380_v37 }
 0x1fb   :  { %2806 = vtanh.f32 %v955_v29  ;;  %v2523_v35 = vpop.f32.mrb[24].mxu0  ;;  %v798_v13 = vadd.f32 %v3422_v1, %v3378_v34 }
 0x1fc   :  { %v958_v4 = vadd.f32 %v2523_v35, %v777_v8  ;;  %v910_v39 = vpop.f32.mrb[25].mxu0  ;;  %v981_v8 = vmul.f32 0.5, %v2795_v0  ;;  %v998_v18 = vadd.f32 0.5, %v982_v44 }
 0x1fd   :  { %v957_v46 = vadd.f32 %v910_v39, %v774_v62 }
 0x1fe   :  { %2808 = vtanh.f32 %v958_v4 }
 0x1ff   :  { %2810 = vtanh.f32 %v957_v46  ;;  %v2526_v19 = vpop.f32.mrb[26].mxu0 }
 0x200   :  { %v2797_v45 = vpop.eup %2796  ;;  %v960_v43 = vadd.f32 %v2526_v19, %v785_v9  ;;  %v920_v63 = vpop.f32.mrb[27].mxu0 }
 0x201   :  { %v2799_v60 = vpop.eup %2798  ;;  %v986_v14 = vmul.f32 0.5, %v2797_v45  ;;  %v959_v33 = vadd.f32 %v920_v63, %v782_v7  ;;  %v997_v63 = vadd.f32 0.5, %v981_v8 }
 0x202   :  { %v2801_v20 = vpop.eup %2800  ;;  %v985_v11 = vmul.f32 0.5, %v2799_v60  ;;  %2812 = vtanh.f32 %v960_v43 }
 0x203   :  { %v2803_v23 = vpop.eup %2802  ;;  %2814 = vtanh.f32 %v959_v33  ;;  %v2529_v26 = vpop.f32.mrb[28].mxu0  ;;  %v1002_v39 = vadd.f32 0.5, %v986_v14  ;;  %v984_v45 = vmul.f32 0.5, %v2801_v20 }
 0x204   :  { %v2805_v29 = vpop.eup %2804  ;;  %v962_v62 = vadd.f32 %v2529_v26, %v793_v6  ;;  %v930_v35 = vpop.f32.mrb[29].mxu0  ;;  %v1001_v7 = vadd.f32 0.5, %v985_v11  ;;  %v983_v60 = vmul.f32 0.5, %v2803_v23 }
 0x205   :  { %v2807_v4 = vpop.eup %2806  ;;  %v988_v46 = vmul.f32 0.5, %v2805_v29  ;;  %v961_v9 = vadd.f32 %v930_v35, %v790_v40  ;;  %v3989_v40 = vld [vmem:[#allocation9_spill] sm:$0xff]  ;;  %v3990_v35 = vld [vmem:[#allocation7_spill] sm:$0xff]  ;;  %v1000_v1 = vadd.f32 0.5, %v984_v45 }
 0x206   :  { %v987_v19 = vmul.f32 0.5, %v2807_v4  ;;  %2816 = vtanh.f32 %v962_v62  ;;  %v1014_v26 = vmul.f32 %v1002_v39, %v3989_v40  ;;  %v1013_v62 = vmul.f32 %v1001_v7, %v3990_v35 }
 0x207   :  { %2818 = vtanh.f32 %v961_v9  ;;  %v2532_v43 = vpop.f32.mrb[30].mxu0  ;;  %v1004_v29 = vadd.f32 0.5, %v988_v46  ;;  %v999_v8 = vadd.f32 0.5, %v983_v60  ;;  %v3992_v46 = vld [vmem:[#allocation6_spill] sm:$0xff] }
 0x208   :  { %v2809_v0 = vpop.eup %2808  ;;  %v964_v33 = vadd.f32 %v2532_v43, %v801_v61  ;;  %v940_v14 = vpop.f32.mrb[31].mxu0  ;;  %v1003_v4 = vadd.f32 0.5, %v987_v19  ;;  %v3991_v61 = vld [vmem:[#allocation8_spill] sm:$0xff] }
 0x209   :  { %v2811_v6 = vpop.eup %2810  ;;  %v1018_v42 = vmul.f32 %v2809_v0, %v998_v18  ;;  %v963_v11 = vadd.f32 %v940_v14, %v798_v13  ;;  %v1016_v43 = vmul.f32 %v1004_v29, %v3991_v61 }
 0x20a   :  { %v1017_v37 = vmul.f32 %v2811_v6, %v997_v63  ;;  %2820 = vtanh.f32 %v964_v33  ;;  %v1015_v13 = vmul.f32 %v1003_v4, %v3992_v46  ;;  %v3616_v46 = vld [vmem:[%s3933_s2 + $0x10] sm:$0xff] }
 0x20b   :  { %v3592_v20 = vadd.f32 %v1018_v42, %v1014_v26  ;;  %2822 = vtanh.f32 %v963_v11 }
 0x20c   :  { %v2813_v44 = vpop.eup %2812  ;;  %v3594_v23 = vadd.f32 %v1017_v37, %v1013_v62 }
 0x20d   :  { %v2815_v9 = vpop.eup %2814  ;;  %2824 = vtanh.f32 %v3592_v20  ;;  %v1020_v39 = vmul.f32 %v2813_v44, %v1000_v1 }
 0x20e   :  { %2826 = vtanh.f32 %v3594_v23  ;;  %v1019_v7 = vmul.f32 %v2815_v9, %v999_v8 }
 0x20f   :  { %v3600_v19 = vadd.f32 %v1020_v39, %v1016_v43  ;;  %v3609_v39 = vld [vmem:[%s3933_s2 + $0x8] sm:$0xff] }
 0x210   :  { %v2817_v18 = vpop.eup %2816  ;;  %v3602_v45 = vadd.f32 %v1019_v7, %v1015_v13  ;;  %v3623_v13 = vld [vmem:[%s3933_s2 + $0x18] sm:$0xff]  ;;  %v3630_v7 = vld [vmem:[%s3933_s2 + $0x20] sm:$0xff] }
 0x211   :  { %v2819_v0 = vpop.eup %2818  ;;  %2828 = vtanh.f32 %v3600_v19  ;;  %v994_v37 = vmul.f32 0.5, %v2817_v18  ;;  %v3637_v18 = vld [vmem:[%s3933_s2 + $0x28] sm:$0xff] }
 0x212   :  { %2830 = vtanh.f32 %v3602_v45  ;;  %v993_v63 = vmul.f32 0.5, %v2819_v0 }
 0x213   :  { %v1010_v14 = vadd.f32 0.5, %v994_v37 }
 0x214   :  { %v2821_v60 = vpop.eup %2820  ;;  %v1009_v26 = vadd.f32 0.5, %v993_v63 }
 0x215   :  { %v2823_v33 = vpop.eup %2822  ;;  %v996_v6 = vmul.f32 0.5, %v2821_v60 }
 0x216   :  { %v995_v29 = vmul.f32 0.5, %v2823_v33 }
 0x217   :  { %v2825_v40 = vpop.eup %2824  ;;  %v1012_v62 = vadd.f32 0.5, %v996_v6 }
 0x218   :  { %v2827_v42 = vpop.eup %2826  ;;  %v1030_v11 = vmul.f32 %v2825_v40, %v1010_v14  ;;  %v1011_v1 = vadd.f32 0.5, %v995_v29  ;;  %v1112_v29 = vadd.f32 %v3472_v57, %v3356_v59 }
 0x219   :  { %v1029_v35 = vmul.f32 %v2827_v42, %v1009_v26  ;;  %v3993_v42 = vld [vmem:[#allocation11_spill] sm:$0xff] }
 0x21b   :  { %v2829_v4 = vpop.eup %2828  ;;  %v2702_v44 = vpack.c.bf16 %v1030_v11, %v1029_v35  ;;  %v1109_v11 = vadd.f32 %v3993_v42, %v3354_v58 }
 0x21c   :  { %v2831_v8 = vpop.eup %2830  ;;  %v1032_v9 = vmul.f32 %v2829_v4, %v1012_v62 }
 0x21d   :  { %2703 = vmatprep.subr.bf16.mxu0 %v2702_v44  ;;  %v1031_v61 = vmul.f32 %v2831_v8, %v1011_v1  ;;  %v3994_v1 = vld [vmem:[#allocation12_spill] sm:$0xff] }
 0x21e   :  { %2705 = vmatpush3.bf16.msra.mxu0 %v2702_v44  ;;  %v1120_v44 = vadd.f32 %v3994_v1, %v3364_v25 }
 0x21f   :  { %v2706_v43 = vpack.c.bf16 %v1032_v9, %v1031_v61  ;;  %v3995_v9 = vld [vmem:[#allocation10_spill] sm:$0xff] }
 0x220   :  { %v1117_v61 = vadd.f32 %v3995_v9, %v3362_v24 }
 0x221   :  { %2707 = vmatprep.subr.bf16.mxu0 %v2706_v43 }
 0x222   :  { %2709 = vmatpush3.bf16.msra.mxu0 %v2706_v43 }
 0x225   :  { %2560 = vmatmul.mubr.msk.f32.vlgmr.msra.gmra.mrb[32].mxu0 %vm420_vm0, %v3609_v39 }
 0x226   :  { %2562 = vmatprep.mubr.msk.f32.mxu0 %vm420_vm0, %v3616_v46 }
 0x229   :  { %2563 = vmatmul.mubr.msk.f32.gmra.mrb[34].mxu0 %vm420_vm0, %v3623_v13 }
 0x22a   :  { %2565 = vmatprep.mubr.msk.f32.mxu0 %vm420_vm0, %v3630_v7 }
 0x22d   :  { %2566 = vmatmul.mubr.msk.f32.gmra.mrb[36].mxu0 %vm420_vm0, %v3637_v18 }
 0x22e   :  { %2568 = vmatprep.mubr.msk.f32.mxu0 %vm420_vm0, %v3105_v12  ;;  %v3664_v12 = vld [vmem:[%s3933_s2] sm:$0xff] }
 0x231   :  { %2569 = vmatmul.mubr.msk.f32.gmra.mrb[38].mxu0 %vm420_vm0, %v3124_v15  ;;  %v1080_v15 = vadd.f32 %v3440_v41, %v3342_v50  ;;  %v1096_v41 = vadd.f32 %v3456_v5, %v3344_v51 }
 0x232   :  { %2571 = vmatprep.mubr.msk.f32.mxu0 %vm420_vm0, %v3129_v16  ;;  %v1077_v16 = vadd.f32 %v3432_v38, %v3338_v48  ;;  %v1093_v38 = vadd.f32 %v3448_v21, %v3340_v49 }
 0x235   :  { %2572 = vmatmul.mubr.msk.f32.gmra.mrb[40].mxu0 %vm420_vm0, %v3136_v17 }
 0x236   :  { %2574 = vmatprep.mubr.msk.f32.mxu0 %vm420_vm0, %v3159_v22 }
 0x239   :  { %2575 = vmatmul.mubr.msk.f32.gmra.mrb[42].mxu0 %vm420_vm0, %v3184_v27 }
 0x23a   :  { %2577 = vmatprep.mubr.msk.f32.mxu0 %vm420_vm0, %v3189_v28 }
 0x23d   :  { %2578 = vmatmul.mubr.msk.f32.gmra.mrb[44].mxu0 %vm420_vm0, %v3208_v31  ;;  %v1088_v31 = vadd.f32 %v3436_v2, %v3348_v53  ;;  %v1104_v2 = vadd.f32 %v3452_v3, %v3352_v55 }
 0x23e   :  { %2580 = vmatprep.mubr.msk.f32.mxu0 %vm420_vm0, %v3213_v32  ;;  %v1085_v32 = vadd.f32 %v3430_v30, %v3346_v52  ;;  %v1101_v30 = vadd.f32 %v3446_v10, %v3350_v54 }
 0x241   :  { %2581 = vmatmul.mubr.msk.f32.gmra.mrb[46].mxu0 %vm420_vm0, %v3233_v36 }
 0x242   :  { %2609 = vmatprep.mubr.msk.f32.mxu0 %vm420_vm0, %v3664_v12 }
 0x2f8   :  { %v2561_v17 = vpop.f32.mrb[32].mxu0 }
 0x2f9   :  { %v1285_v22 = vadd.f32 %v2561_v17, %v1080_v15  ;;  %v1205_v27 = vpop.f32.mrb[33].mxu0 }
 0x2fa   :  { %v1284_v28 = vadd.f32 %v1205_v27, %v1077_v16 }
 0x2fb   :  { %2832 = vtanh.f32 %v1285_v22 }
 0x2fc   :  { %v2564_v36 = vpop.f32.mrb[34].mxu0  ;;  %2834 = vtanh.f32 %v1284_v28 }
 0x2fd   :  { %v1287_v0 = vadd.f32 %v2564_v36, %v1088_v31  ;;  %v1215_v37 = vpop.f32.mrb[35].mxu0  ;;  %v3996_v31 = vld [vmem:[#allocation16_spill] sm:$0xff] }
 0x2fe   :  { %v1286_v63 = vadd.f32 %v1215_v37, %v1085_v32  ;;  %v1128_v32 = vadd.f32 %v3996_v31, %v3372_v56  ;;  %v3997_v37 = vld [vmem:[#allocation14_spill] sm:$0xff] }
 0x300   :  { %v2567_v60 = vpop.f32.mrb[36].mxu0 }
 0x301   :  { %v1289_v33 = vadd.f32 %v2567_v60, %v1096_v41  ;;  %v1225_v14 = vpop.f32.mrb[37].mxu0 }
 0x302   :  { %v1288_v6 = vadd.f32 %v1225_v14, %v1093_v38 }
 0x303   :  { %2836 = vtanh.f32 %v1289_v33 }
 0x304   :  { %2838 = vtanh.f32 %v1288_v6  ;;  %v2570_v40 = vpop.f32.mrb[38].mxu0 }
 0x305   :  { %2840 = vtanh.f32 %v1287_v0  ;;  %v1291_v5 = vadd.f32 %v2570_v40, %v1104_v2  ;;  %v1235_v26 = vpop.f32.mrb[39].mxu0  ;;  %v2833_v10 = vpop.eup %2832 }
 0x306   :  { %2842 = vtanh.f32 %v1286_v63  ;;  %v1290_v21 = vadd.f32 %v1235_v26, %v1101_v30  ;;  %v2835_v8 = vpop.eup %2834  ;;  %v1125_v63 = vadd.f32 %v3997_v37, %v3370_v47  ;;  %v1317_v41 = vmul.f32 0.5, %v2833_v10  ;;  %v3998_v26 = vld [vmem:[#allocation5_spill] sm:$0xff] }
 0x307   :  { %2844 = vtanh.f32 %v1291_v5  ;;  %v1316_v33 = vmul.f32 0.5, %v2835_v8 }
 0x308   :  { %2846 = vtanh.f32 %v1290_v21  ;;  %v2573_v3 = vpop.f32.mrb[40].mxu0  ;;  %v3999_v21 = vld [vmem:[#allocation15_spill] sm:$0xff] }
 0x309   :  { %v1293_v35 = vadd.f32 %v2573_v3, %v1112_v29  ;;  %v1245_v62 = vpop.f32.mrb[41].mxu0  ;;  %v1136_v29 = vadd.f32 %v3999_v21, %v3998_v26  ;;  %v4000_v3 = vld [vmem:[#allocation13_spill] sm:$0xff] }
 0x30a   :  { %v1292_v4 = vadd.f32 %v1245_v62, %v1109_v11  ;;  %v1333_v62 = vadd.f32 0.5, %v1317_v41 }
 0x30b   :  { %2848 = vtanh.f32 %v1293_v35  ;;  %v1133_v35 = vadd.f32 %v4000_v3, %v3378_v34 }
 0x30c   :  { %2850 = vtanh.f32 %v1292_v4  ;;  %v2576_v57 = vpop.f32.mrb[42].mxu0 }
 0x30d   :  { %v2837_v43 = vpop.eup %2836  ;;  %v1295_v15 = vadd.f32 %v2576_v57, %v1120_v44  ;;  %v1255_v16 = vpop.f32.mrb[43].mxu0  ;;  %v1332_v44 = vadd.f32 0.5, %v1316_v33 }
 0x30e   :  { %v2839_v17 = vpop.eup %2838  ;;  %v1321_v22 = vmul.f32 0.5, %v2837_v43  ;;  %v1294_v27 = vadd.f32 %v1255_v16, %v1117_v61 }
 0x30f   :  { %v2841_v28 = vpop.eup %2840  ;;  %v1320_v36 = vmul.f32 0.5, %v2839_v17  ;;  %2852 = vtanh.f32 %v1295_v15 }
 0x310   :  { %v2843_v0 = vpop.eup %2842  ;;  %2854 = vtanh.f32 %v1294_v27  ;;  %v2579_v38 = vpop.f32.mrb[44].mxu0  ;;  %v1337_v30 = vadd.f32 0.5, %v1321_v22  ;;  %v1319_v4 = vmul.f32 0.5, %v2841_v28 }
 0x311   :  { %v2845_v60 = vpop.eup %2844  ;;  %v1297_v14 = vadd.f32 %v2579_v38, %v1128_v32  ;;  %v1265_v6 = vpop.f32.mrb[45].mxu0  ;;  %v1336_v42 = vadd.f32 0.5, %v1320_v36  ;;  %v1318_v8 = vmul.f32 0.5, %v2843_v0 }
 0x312   :  { %v2847_v2 = vpop.eup %2846  ;;  %v1323_v40 = vmul.f32 0.5, %v2845_v60  ;;  %v1296_v5 = vadd.f32 %v1265_v6, %v1125_v63  ;;  %v1349_v43 = vmul.f32 %v1337_v30, %v3592_v20  ;;  %v1335_v32 = vadd.f32 0.5, %v1319_v4 }
 0x313   :  { %v1322_v11 = vmul.f32 0.5, %v2847_v2  ;;  %2856 = vtanh.f32 %v1297_v14  ;;  %v1348_v22 = vmul.f32 %v1336_v42, %v3594_v23  ;;  %v1334_v37 = vadd.f32 0.5, %v1318_v8 }
 0x314   :  { %2858 = vtanh.f32 %v1296_v5  ;;  %v2582_v10 = vpop.f32.mrb[46].mxu0  ;;  %v1339_v15 = vadd.f32 0.5, %v1323_v40 }
 0x315   :  { %v2849_v1 = vpop.eup %2848  ;;  %v1299_v9 = vadd.f32 %v2582_v10, %v1136_v29  ;;  %v1275_v61 = vpop.f32.mrb[47].mxu0  ;;  %v1338_v27 = vadd.f32 0.5, %v1322_v11 }
 0x316   :  { %v2851_v57 = vpop.eup %2850  ;;  %v1353_v16 = vmul.f32 %v2849_v1, %v1333_v62  ;;  %v1298_v17 = vadd.f32 %v1275_v61, %v1133_v35  ;;  %v1351_v41 = vmul.f32 %v1339_v15, %v3600_v19  ;;  %v3743_v15 = vld [vmem:[%s3933_s2 + $0x40] sm:$0xff] }
 0x317   :  { %v1352_v31 = vmul.f32 %v2851_v57, %v1332_v44  ;;  %2860 = vtanh.f32 %v1299_v9  ;;  %v1350_v38 = vmul.f32 %v1338_v27, %v3602_v45  ;;  %v3729_v57 = vld [vmem:[%s3933_s2 + $0x30] sm:$0xff]  ;;  %v3771_v27 = vld [vmem:[%s3933_s2 + $0x60] sm:$0xff] }
 0x318   :  { %v3702_v28 = vadd.f32 %v1353_v16, %v1349_v43  ;;  %2862 = vtanh.f32 %v1298_v17  ;;  %v3736_v43 = vld [vmem:[%s3933_s2 + $0x38] sm:$0xff]  ;;  %v3750_v16 = vld [vmem:[%s3933_s2 + $0x48] sm:$0xff]  ;;  %v3757_v17 = vld [vmem:[%s3933_s2 + $0x50] sm:$0xff] }
 0x319   :  { %v2853_v36 = vpop.eup %2852  ;;  %v3704_v0 = vadd.f32 %v1352_v31, %v1348_v22  ;;  %v3764_v22 = vld [vmem:[%s3933_s2 + $0x58] sm:$0xff]  ;;  %v3778_v31 = vld [vmem:[%s3933_s2 + $0x68] sm:$0xff] }
 0x31a   :  { %v2855_v63 = vpop.eup %2854  ;;  %2864 = vtanh.f32 %v3702_v28  ;;  %v1355_v20 = vmul.f32 %v2853_v36, %v1335_v32  ;;  %v3785_v32 = vld [vmem:[%s3933_s2 + $0x70] sm:$0xff]  ;;  %v3792_v36 = vld [vmem:[%s3933_s2 + $0x78] sm:$0xff] }
 0x31b   :  { %2866 = vtanh.f32 %v3704_v0  ;;  %v1354_v23 = vmul.f32 %v2855_v63, %v1334_v37  ;;  %v4001_v37 = vld [vmem:[#allocation20_spill] sm:$0xff] }
 0x31c   :  { %v3710_v60 = vadd.f32 %v1355_v20, %v1351_v41  ;;  %v1415_v63 = vadd.f32 %v4001_v37, %v3342_v50  ;;  %v4002_v41 = vld [vmem:[#allocation18_spill] sm:$0xff] }
 0x31d   :  { %v2857_v33 = vpop.eup %2856  ;;  %v3712_v14 = vadd.f32 %v1354_v23, %v1350_v38  ;;  %v1412_v20 = vadd.f32 %v4002_v41, %v3338_v48 }
 0x31e   :  { %v2859_v6 = vpop.eup %2858  ;;  %2868 = vtanh.f32 %v3710_v60  ;;  %v1329_v2 = vmul.f32 0.5, %v2857_v33 }
 0x31f   :  { %2870 = vtanh.f32 %v3712_v14  ;;  %v1328_v19 = vmul.f32 0.5, %v2859_v6 }
 0x320   :  { %v1345_v5 = vadd.f32 0.5, %v1329_v2  ;;  %v4003_v2 = vld [vmem:[#allocation19_spill] sm:$0xff] }
 0x321   :  { %v2861_v30 = vpop.eup %2860  ;;  %v1344_v29 = vadd.f32 0.5, %v1328_v19  ;;  %v1423_v19 = vadd.f32 %v4003_v2, %v3348_v53 }
 0x322   :  { %v2863_v40 = vpop.eup %2862  ;;  %v1331_v21 = vmul.f32 0.5, %v2861_v30  ;;  %v4004_v30 = vld [vmem:[#allocation17_spill] sm:$0xff] }
 0x323   :  { %v1330_v42 = vmul.f32 0.5, %v2863_v40  ;;  %v1420_v40 = vadd.f32 %v4004_v30, %v3346_v52 }
 0x324   :  { %v2865_v45 = vpop.eup %2864  ;;  %v1347_v62 = vadd.f32 0.5, %v1331_v21 }
 0x325   :  { %v2867_v11 = vpop.eup %2866  ;;  %v1365_v3 = vmul.f32 %v2865_v45, %v1345_v5  ;;  %v1346_v10 = vadd.f32 0.5, %v1330_v42 }
 0x326   :  { %v1364_v35 = vmul.f32 %v2867_v11, %v1344_v29  ;;  %v4005_v29 = vld [vmem:[#allocation24_spill] sm:$0xff]  ;;  %v4006_v11 = vld [vmem:[#allocation22_spill] sm:$0xff] }
 0x327   :  { %v1431_v42 = vadd.f32 %v4005_v29, %v3344_v51 }
 0x328   :  { %v2869_v4 = vpop.eup %2868  ;;  %v2710_v1 = vpack.c.bf16 %v1365_v3, %v1364_v35  ;;  %v1428_v3 = vadd.f32 %v4006_v11, %v3340_v49 }
 0x329   :  { %v2871_v44 = vpop.eup %2870  ;;  %v1367_v8 = vmul.f32 %v2869_v4, %v1347_v62 }
 0x32a   :  { %2711 = vmatprep.subr.bf16.mxu0 %v2710_v1  ;;  %v1366_v9 = vmul.f32 %v2871_v44, %v1346_v10 }
 0x32b   :  { %2713 = vmatpush3.bf16.msra.mxu0 %v2710_v1  ;;  %v4007_v1 = vld [vmem:[#allocation23_spill] sm:$0xff] }
 0x32c   :  { %v2714_v61 = vpack.c.bf16 %v1367_v8, %v1366_v9  ;;  %v1439_v44 = vadd.f32 %v4007_v1, %v3352_v55  ;;  %v4008_v8 = vld [vmem:[#allocation21_spill] sm:$0xff] }
 0x32d   :  { %v1436_v9 = vadd.f32 %v4008_v8, %v3350_v54 }
 0x32e   :  { %2715 = vmatprep.subr.bf16.mxu0 %v2714_v61 }
 0x32f   :  { %2717 = vmatpush3.bf16.msra.mxu0 %v2714_v61 }
 0x332   :  { %2610 = vmatmul.mubr.msk.f32.vlgmr.msra.gmra.mrb[48].mxu0 %vm420_vm0, %v3609_v39 }
 0x333   :  { %2612 = vmatprep.mubr.msk.f32.mxu0 %vm420_vm0, %v3616_v46 }
 0x336   :  { %2613 = vmatmul.mubr.msk.f32.gmra.mrb[50].mxu0 %vm420_vm0, %v3623_v13 }
 0x337   :  { %2615 = vmatprep.mubr.msk.f32.mxu0 %vm420_vm0, %v3630_v7 }
 0x33a   :  { %2616 = vmatmul.mubr.msk.f32.gmra.mrb[52].mxu0 %vm420_vm0, %v3637_v18 }
 0x33b   :  { %2618 = vmatprep.mubr.msk.f32.mxu0 %vm420_vm0, %v3729_v57 }
 0x33e   :  { %2619 = vmatmul.mubr.msk.f32.gmra.mrb[54].mxu0 %vm420_vm0, %v3736_v43 }
 0x33f   :  { %2621 = vmatprep.mubr.msk.f32.mxu0 %vm420_vm0, %v3743_v15 }
 0x342   :  { %2622 = vmatmul.mubr.msk.f32.gmra.mrb[56].mxu0 %vm420_vm0, %v3750_v16 }
 0x343   :  { %2624 = vmatprep.mubr.msk.f32.mxu0 %vm420_vm0, %v3757_v17 }
 0x346   :  { %2625 = vmatmul.mubr.msk.f32.gmra.mrb[58].mxu0 %vm420_vm0, %v3764_v22 }
 0x347   :  { %2627 = vmatprep.mubr.msk.f32.mxu0 %vm420_vm0, %v3771_v27 }
 0x34a   :  { %2628 = vmatmul.mubr.msk.f32.gmra.mrb[60].mxu0 %vm420_vm0, %v3778_v31 }
 0x34b   :  { %2630 = vmatprep.mubr.msk.f32.mxu0 %vm420_vm0, %v3785_v32 }
 0x34e   :  { %2631 = vmatmul.mubr.msk.f32.gmra.mrb[62].mxu0 %vm420_vm0, %v3792_v36 }
 0x34f   :  { %2659 = vmatprep.mubr.msk.f32.mxu0 %vm420_vm0, %v3664_v12 }
 0x405   :  { %v2611_v38 = vpop.f32.mrb[48].mxu0 }
 0x406   :  { %v1620_v23 = vadd.f32 %v2611_v38, %v1415_v63  ;;  %v1540_v33 = vpop.f32.mrb[49].mxu0 }
 0x407   :  { %v1619_v6 = vadd.f32 %v1540_v33, %v1412_v20  ;;  %v4009_v20 = vld [vmem:[#allocation28_spill] sm:$0xff] }
 0x408   :  { %2872 = vtanh.f32 %v1620_v23  ;;  %v1447_v38 = vadd.f32 %v4009_v20, %v3356_v59  ;;  %v4010_v23 = vld [vmem:[#allocation26_spill] sm:$0xff] }
 0x409   :  { %v2614_v5 = vpop.f32.mrb[50].mxu0  ;;  %2874 = vtanh.f32 %v1619_v6  ;;  %v1444_v33 = vadd.f32 %v4010_v23, %v3354_v58 }
 0x40a   :  { %v1622_v21 = vadd.f32 %v2614_v5, %v1423_v19  ;;  %v1550_v45 = vpop.f32.mrb[51].mxu0  ;;  %v4011_v5 = vld [vmem:[#allocation27_spill] sm:$0xff] }
 0x40b   :  { %v1621_v12 = vadd.f32 %v1550_v45, %v1420_v40 }
 0x40d   :  { %v2617_v35 = vpop.f32.mrb[52].mxu0 }
 0x40e   :  { %v1624_v62 = vadd.f32 %v2617_v35, %v1431_v42  ;;  %v1560_v4 = vpop.f32.mrb[53].mxu0 }
 0x40f   :  { %v1623_v10 = vadd.f32 %v1560_v4, %v1428_v3 }
 0x410   :  { %2876 = vtanh.f32 %v1624_v62 }
 0x411   :  { %2878 = vtanh.f32 %v1623_v10  ;;  %v2620_v61 = vpop.f32.mrb[54].mxu0 }
 0x412   :  { %2880 = vtanh.f32 %v1622_v21  ;;  %v1626_v37 = vadd.f32 %v2620_v61, %v1439_v44  ;;  %v1570_v63 = vpop.f32.mrb[55].mxu0  ;;  %v2873_v40 = vpop.eup %2872  ;;  %v1455_v21 = vadd.f32 %v4011_v5, %v3364_v25  ;;  %v4013_v44 = vld [vmem:[#allocation32_spill] sm:$0xff] }
 0x413   :  { %2882 = vtanh.f32 %v1621_v12  ;;  %v1625_v41 = vadd.f32 %v1570_v63, %v1436_v9  ;;  %v2875_v45 = vpop.eup %2874  ;;  %v4012_v12 = vld [vmem:[#allocation25_spill] sm:$0xff]  ;;  %v1463_v8 = vadd.f32 %v4013_v44, %v3372_v56 }
 0x414   :  { %2884 = vtanh.f32 %v1626_v37  ;;  %v1452_v29 = vadd.f32 %v4012_v12, %v3362_v24  ;;  %v4014_v37 = vld [vmem:[#allocation30_spill] sm:$0xff]  ;;  %v1651_v23 = vmul.f32 0.5, %v2875_v45 }
 0x415   :  { %2886 = vtanh.f32 %v1625_v41  ;;  %v2623_v6 = vpop.f32.mrb[56].mxu0  ;;  %v1460_v63 = vadd.f32 %v4014_v37, %v3370_v47  ;;  %v1652_v41 = vmul.f32 0.5, %v2873_v40 }
 0x416   :  { %v1628_v2 = vadd.f32 %v2623_v6, %v1447_v38  ;;  %v1580_v19 = vpop.f32.mrb[57].mxu0 }
 0x417   :  { %v1627_v30 = vadd.f32 %v1580_v19, %v1444_v33  ;;  %v1668_v40 = vadd.f32 0.5, %v1652_v41 }
 0x418   :  { %2888 = vtanh.f32 %v1628_v2 }
 0x419   :  { %2890 = vtanh.f32 %v1627_v30  ;;  %v2626_v42 = vpop.f32.mrb[58].mxu0 }
 0x41a   :  { %v2877_v11 = vpop.eup %2876  ;;  %v1630_v3 = vadd.f32 %v2626_v42, %v1455_v21  ;;  %v1590_v35 = vpop.f32.mrb[59].mxu0  ;;  %v4015_v21 = vld [vmem:[#allocation31_spill] sm:$0xff] }
 0x41b   :  { %v2879_v62 = vpop.eup %2878  ;;  %v1656_v4 = vmul.f32 0.5, %v2877_v11  ;;  %v1629_v10 = vadd.f32 %v1590_v35, %v1452_v29  ;;  %v1471_v12 = vadd.f32 %v4015_v21, %v3998_v26  ;;  %v4016_v11 = vld [vmem:[#allocation29_spill] sm:$0xff] }
 0x41c   :  { %v2881_v1 = vpop.eup %2880  ;;  %v1655_v9 = vmul.f32 0.5, %v2879_v62  ;;  %2892 = vtanh.f32 %v1630_v3  ;;  %v1468_v3 = vadd.f32 %v4016_v11, %v3378_v34 }
 0x41d   :  { %v2883_v61 = vpop.eup %2882  ;;  %2894 = vtanh.f32 %v1629_v10  ;;  %v2629_v20 = vpop.f32.mrb[60].mxu0  ;;  %v1672_v19 = vadd.f32 0.5, %v1656_v4  ;;  %v1654_v35 = vmul.f32 0.5, %v2881_v1  ;;  %v1667_v10 = vadd.f32 0.5, %v1651_v23 }
 0x41e   :  { %v2885_v38 = vpop.eup %2884  ;;  %v1632_v33 = vadd.f32 %v2629_v20, %v1463_v8  ;;  %v1600_v6 = vpop.f32.mrb[61].mxu0  ;;  %v1671_v29 = vadd.f32 0.5, %v1655_v9  ;;  %v1653_v44 = vmul.f32 0.5, %v2883_v61 }
 0x41f   :  { %v2887_v2 = vpop.eup %2886  ;;  %v1658_v30 = vmul.f32 0.5, %v2885_v38  ;;  %v1631_v5 = vadd.f32 %v1600_v6, %v1460_v63  ;;  %v1684_v63 = vmul.f32 %v1672_v19, %v3702_v28  ;;  %v1670_v41 = vadd.f32 0.5, %v1654_v35 }
 0x420   :  { %v1657_v42 = vmul.f32 0.5, %v2887_v2  ;;  %2896 = vtanh.f32 %v1632_v33  ;;  %v1683_v33 = vmul.f32 %v1671_v29, %v3704_v0  ;;  %v1669_v23 = vadd.f32 0.5, %v1653_v44 }
 0x421   :  { %2898 = vtanh.f32 %v1631_v5  ;;  %v2632_v62 = vpop.f32.mrb[62].mxu0  ;;  %v1674_v20 = vadd.f32 0.5, %v1658_v30 }
 0x422   :  { %v2889_v45 = vpop.eup %2888  ;;  %v1634_v8 = vadd.f32 %v2632_v62, %v1471_v12  ;;  %v1610_v4 = vpop.f32.mrb[63].mxu0  ;;  %v1673_v6 = vadd.f32 0.5, %v1657_v42 }
 0x423   :  { %v2891_v37 = vpop.eup %2890  ;;  %v1688_v38 = vmul.f32 %v2889_v45, %v1668_v40  ;;  %v1633_v9 = vadd.f32 %v1610_v4, %v1468_v3  ;;  %v1686_v12 = vmul.f32 %v1674_v20, %v3710_v60 }
 0x424   :  { %v1687_v2 = vmul.f32 %v2891_v37, %v1667_v10  ;;  %2900 = vtanh.f32 %v1634_v8  ;;  %v1685_v19 = vmul.f32 %v1673_v6, %v3712_v14 }
 0x425   :  { %v3832_v1 = vadd.f32 %v1688_v38, %v1684_v63  ;;  %2902 = vtanh.f32 %v1633_v9 }
 0x426   :  { %v2893_v5 = vpop.eup %2892  ;;  %v3834_v61 = vadd.f32 %v1687_v2, %v1683_v33 }
 0x427   :  { %v2895_v21 = vpop.eup %2894  ;;  %2904 = vtanh.f32 %v3832_v1  ;;  %v1690_v28 = vmul.f32 %v2893_v5, %v1670_v41 }
 0x428   :  { %2906 = vtanh.f32 %v3834_v61  ;;  %v1689_v0 = vmul.f32 %v2895_v21, %v1669_v23 }
 0x429   :  { %v3840_v30 = vadd.f32 %v1690_v28, %v1686_v12  ;;  %v4022_v12 = vld [vmem:[#allocation40_spill] sm:$0xff]  ;;  %v4023_v28 = vld [vmem:[#allocation38_spill] sm:$0xff] }
 0x42a   :  { %v2897_v29 = vpop.eup %2896  ;;  %v3842_v42 = vadd.f32 %v1689_v0, %v1685_v19 }
 0x42b   :  { %v2899_v11 = vpop.eup %2898  ;;  %2908 = vtanh.f32 %v3840_v30  ;;  %v1664_v3 = vmul.f32 0.5, %v2897_v29 }
 0x42c   :  { %2910 = vtanh.f32 %v3842_v42  ;;  %v1663_v60 = vmul.f32 0.5, %v2899_v11 }
 0x42d   :  { %v1680_v62 = vadd.f32 0.5, %v1664_v3 }
 0x42e   :  { %v2901_v40 = vpop.eup %2900  ;;  %v1679_v10 = vadd.f32 0.5, %v1663_v60 }
 0x42f   :  { %v2903_v35 = vpop.eup %2902  ;;  %v1666_v45 = vmul.f32 0.5, %v2901_v40 }
 0x430   :  { %v1665_v44 = vmul.f32 0.5, %v2903_v35 }
 0x431   :  { %v2905_v14 = vpop.eup %2904  ;;  %v1682_v63 = vadd.f32 0.5, %v1666_v45 }
 0x432   :  { %v2907_v8 = vpop.eup %2906  ;;  %v1700_v4 = vmul.f32 %v2905_v14, %v1680_v62  ;;  %v1681_v38 = vadd.f32 0.5, %v1665_v44  ;;  %v4026_v62 = vld [vmem:[#allocation44_spill] sm:$0xff]  ;;  %v4027_v14 = vld [vmem:[#allocation42_spill] sm:$0xff] }
 0x433   :  { %v1699_v37 = vmul.f32 %v2907_v8, %v1679_v10  ;;  %v1782_v45 = vadd.f32 %v4026_v62, %v3356_v59  ;;  %v1779_v10 = vadd.f32 %v4027_v14, %v3354_v58 }
 0x435   :  { %v2909_v20 = vpop.eup %2908  ;;  %v2718_v9 = vpack.c.bf16 %v1700_v4, %v1699_v37  ;;  %v4028_v37 = vld [vmem:[#allocation43_spill] sm:$0xff] }
 0x436   :  { %v2911_v33 = vpop.eup %2910  ;;  %v1702_v6 = vmul.f32 %v2909_v20, %v1682_v63  ;;  %v1790_v63 = vadd.f32 %v4028_v37, %v3364_v25 }
 0x437   :  { %2719 = vmatprep.subr.bf16.mxu0 %v2718_v9  ;;  %v1701_v2 = vmul.f32 %v2911_v33, %v1681_v38  ;;  %v4029_v38 = vld [vmem:[#allocation41_spill] sm:$0xff] }
 0x438   :  { %2721 = vmatpush3.bf16.msra.mxu0 %v2718_v9  ;;  %v1787_v9 = vadd.f32 %v4029_v38, %v3362_v24 }
 0x439   :  { %v2722_v41 = vpack.c.bf16 %v1702_v6, %v1701_v2 }
 0x43b   :  { %2723 = vmatprep.subr.bf16.mxu0 %v2722_v41 }
 0x43c   :  { %2725 = vmatpush3.bf16.msra.mxu0 %v2722_v41 }
 0x43f   :  { %2660 = vmatmul.mubr.msk.f32.vlgmr.msra.gmra.mrb[64].mxu0 %vm420_vm0, %v3609_v39  ;;  %v2998_v39 = vmov 0.0|0.0  }
 0x440   :  { %2662 = vmatprep.mubr.msk.f32.mxu0 %vm420_vm0, %v3616_v46  ;;  %2726 = vmatprep.subr.bf16.mxu1 %v2998_v39  ;;  %v4017_v46 = vmov 0.0  }
 0x441   :  { %2691 = vmatprep.mubr.msk.f32.mxu1 %vm2999_vm2, %v4017_v46 }
 0x443   :  { %2663 = vmatmul.mubr.msk.f32.gmra.mrb[66].mxu0 %vm420_vm0, %v3623_v13  ;;  %v4018_v13 = vld [vmem:[#allocation36_spill] sm:$0xff] }
 0x444   :  { %2665 = vmatprep.mubr.msk.f32.mxu0 %vm420_vm0, %v3630_v7  ;;  %v1750_v7 = vadd.f32 %v4018_v13, %v3342_v50  ;;  %v1766_v50 = vadd.f32 %v4022_v12, %v3344_v51 }
 0x447   :  { %2666 = vmatmul.mubr.msk.f32.gmra.mrb[68].mxu0 %vm420_vm0, %v3637_v18  ;;  %v4019_v18 = vld [vmem:[#allocation34_spill] sm:$0xff] }
 0x448   :  { %2668 = vmatprep.mubr.msk.f32.mxu0 %vm420_vm0, %v3729_v57  ;;  %v1747_v57 = vadd.f32 %v4019_v18, %v3338_v48  ;;  %v1763_v48 = vadd.f32 %v4023_v28, %v3340_v49  ;;  %v4033_v28 = vld [vmem:[#allocation45_spill] sm:$0xff] }
 0x44b   :  { %2669 = vmatmul.mubr.msk.f32.gmra.mrb[70].mxu0 %vm420_vm0, %v3736_v43 }
 0x44c   :  { %2671 = vmatprep.mubr.msk.f32.mxu0 %vm420_vm0, %v3743_v15 }
 0x44f   :  { %2672 = vmatmul.mubr.msk.f32.gmra.mrb[72].mxu0 %vm420_vm0, %v3750_v16 }
 0x450   :  { %2674 = vmatprep.mubr.msk.f32.mxu0 %vm420_vm0, %v3757_v17 }
 0x453   :  { %2675 = vmatmul.mubr.msk.f32.gmra.mrb[74].mxu0 %vm420_vm0, %v3764_v22  ;;  %v4020_v22 = vld [vmem:[#allocation35_spill] sm:$0xff] }
 0x454   :  { %2677 = vmatprep.mubr.msk.f32.mxu0 %vm420_vm0, %v3771_v27  ;;  %v1758_v27 = vadd.f32 %v4020_v22, %v3348_v53  ;;  %v4024_v53 = vld [vmem:[#allocation39_spill] sm:$0xff] }
 0x455   :  { %v1774_v3 = vadd.f32 %v4024_v53, %v3352_v55 }
 0x457   :  { %2678 = vmatmul.mubr.msk.f32.gmra.mrb[76].mxu0 %vm420_vm0, %v3778_v31  ;;  %v4021_v31 = vld [vmem:[#allocation33_spill] sm:$0xff] }
 0x458   :  { %2680 = vmatprep.mubr.msk.f32.mxu0 %vm420_vm0, %v3785_v32  ;;  %v1755_v32 = vadd.f32 %v4021_v31, %v3346_v52  ;;  %v4025_v52 = vld [vmem:[#allocation37_spill] sm:$0xff] }
 0x459   :  { %v1771_v60 = vadd.f32 %v4025_v52, %v3350_v54 }
 0x45b   :  { %2681 = vmatmul.mubr.msk.f32.gmra.mrb[78].mxu0 %vm420_vm0, %v3792_v36 }
 0x512   :  { %v2661_v43 = vpop.f32.mrb[64].mxu0 }
 0x513   :  { %v1955_v15 = vadd.f32 %v2661_v43, %v1750_v7  ;;  %v1875_v16 = vpop.f32.mrb[65].mxu0  ;;  %v4030_v7 = vld [vmem:[#allocation48_spill] sm:$0xff]  ;;  %v4031_v43 = vld [vmem:[#allocation46_spill] sm:$0xff] }
 0x514   :  { %v1954_v17 = vadd.f32 %v1875_v16, %v1747_v57  ;;  %v1798_v18 = vadd.f32 %v4030_v7, %v3372_v56 }
 0x515   :  { %2912 = vtanh.f32 %v1955_v15  ;;  %v1795_v15 = vadd.f32 %v4031_v43, %v3370_v47  ;;  %v1803_v47 = vadd.f32 %v4033_v28, %v3378_v34 }
 0x516   :  { %v2664_v36 = vpop.f32.mrb[66].mxu0  ;;  %2914 = vtanh.f32 %v1954_v17 }
 0x517   :  { %v1957_v5 = vadd.f32 %v2664_v36, %v1758_v27  ;;  %v1885_v23 = vpop.f32.mrb[67].mxu0 }
 0x518   :  { %v1956_v21 = vadd.f32 %v1885_v23, %v1755_v32 }
 0x51a   :  { %v2667_v19 = vpop.f32.mrb[68].mxu0 }
 0x51b   :  { %v1959_v0 = vadd.f32 %v2667_v19, %v1766_v50  ;;  %v1895_v29 = vpop.f32.mrb[69].mxu0 }
 0x51c   :  { %v1958_v11 = vadd.f32 %v1895_v29, %v1763_v48 }
 0x51d   :  { %2916 = vtanh.f32 %v1959_v0 }
 0x51e   :  { %2918 = vtanh.f32 %v1958_v11  ;;  %v2670_v40 = vpop.f32.mrb[70].mxu0 }
 0x51f   :  { %2920 = vtanh.f32 %v1957_v5  ;;  %v1961_v51 = vadd.f32 %v2670_v40, %v1774_v3  ;;  %v1905_v35 = vpop.f32.mrb[71].mxu0  ;;  %v2913_v54 = vpop.eup %2912 }
 0x520   :  { %2922 = vtanh.f32 %v1956_v21  ;;  %v1960_v49 = vadd.f32 %v1905_v35, %v1771_v60  ;;  %v2915_v20 = vpop.eup %2914  ;;  %v1987_v16 = vmul.f32 0.5, %v2913_v54  ;;  %v4032_v21 = vld [vmem:[#allocation47_spill] sm:$0xff] }
 0x521   :  { %2924 = vtanh.f32 %v1961_v51  ;;  %v1986_v22 = vmul.f32 0.5, %v2915_v20  ;;  %v1806_v56 = vadd.f32 %v4032_v21, %v3998_v26 }
 0x522   :  { %2926 = vtanh.f32 %v1960_v49  ;;  %v2673_v55 = vpop.f32.mrb[72].mxu0  ;;  %v2003_v48 = vadd.f32 0.5, %v1987_v16 }
 0x523   :  { %v1963_v44 = vadd.f32 %v2673_v55, %v1782_v45  ;;  %v1915_v8 = vpop.f32.mrb[73].mxu0  ;;  %v2002_v11 = vadd.f32 0.5, %v1986_v22  ;;  %v2038_v22 = vld [vmem:[%s3935_s4] sm:$0xff]  ;;  %s3000_s4 = smov [#allocation2]  }
 0x524   :  { %v1962_v4 = vadd.f32 %v1915_v8, %v1779_v10  ;;  %s2142_s18 = sshll.u32 %s3000_s4, 4  ;;  %s2143_s18 = int_to_ptr.vmem [resolvable:$true] %s2142_s18 }
 0x525   :  { %2928 = vtanh.f32 %v1963_v44  ;;  %s2972_s19 = scalar_lea.vmem %s2143_s18, 128  ;;  %p2977_p1 = scmp.lt.s32.totalorder %s2143_s18, %s2143_s18 }
 0x526   :  { %2930 = vtanh.f32 %v1962_v4  ;;  %v2676_v59 = vpop.f32.mrb[74].mxu0  ;;  %p2973_p0 = scmp.ne.s32.totalorder %s2143_s18, %s2972_s19  ;;  %p2978_p2 = scmp.lt.s32.totalorder %s2972_s19, %s2972_s19 }
 0x527   :  { %v2917_v33 = vpop.eup %2916  ;;  %v1965_v6 = vadd.f32 %v2676_v59, %v1790_v63  ;;  %v1925_v2 = vpop.f32.mrb[75].mxu0 }
 0x528   :  { %v2919_v58 = vpop.eup %2918  ;;  %v1991_v41 = vmul.f32 0.5, %v2917_v33  ;;  %v1964_v46 = vadd.f32 %v1925_v2, %v1787_v9  ;;  %p2979_p3 = por %p2978_p2, %p2977_p1 }
 0x529   :  { %v2921_v13 = vpop.eup %2920  ;;  %v1990_v57 = vmul.f32 0.5, %v2919_v58  ;;  %2932 = vtanh.f32 %v1965_v6 }
 0x52a   :  { %v2923_v25 = vpop.eup %2922  ;;  %2934 = vtanh.f32 %v1964_v46  ;;  %v2679_v24 = vpop.f32.mrb[76].mxu0  ;;  %v2007_v36 = vadd.f32 0.5, %v1991_v41  ;;  %v1989_v19 = vmul.f32 0.5, %v2921_v13  ;;  %p2980_p4 = pnand %p2979_p3, %p2973_p0 }
 0x52b   :  { %v2925_v17 = vpop.eup %2924  ;;  %v1967_v27 = vadd.f32 %v2679_v24, %v1798_v18  ;;  %v1935_v31 = vpop.f32.mrb[77].mxu0  ;;  %v2006_v12 = vadd.f32 0.5, %v1990_v57  ;;  %v1988_v53 = vmul.f32 0.5, %v2923_v25 }
 0x52c   :  { %v2927_v32 = vpop.eup %2926  ;;  %v1993_v5 = vmul.f32 0.5, %v2925_v17  ;;  %v1966_v23 = vadd.f32 %v1935_v31, %v1795_v15  ;;  %v2019_v40 = vmul.f32 %v2007_v36, %v3832_v1  ;;  %v2005_v34 = vadd.f32 0.5, %v1989_v19 }
 0x52d   :  { %v1992_v50 = vmul.f32 0.5, %v2927_v32  ;;  %2936 = vtanh.f32 %v1967_v27  ;;  %v2018_v49 = vmul.f32 %v2006_v12, %v3834_v61  ;;  %v2004_v55 = vadd.f32 0.5, %v1988_v53  ;;  %v2043_v27 = vpop.permute.xlu0 %2042 }
 0x52e   :  { %2938 = vtanh.f32 %v1966_v23  ;;  %v2682_v0 = vpop.f32.mrb[78].mxu0  ;;  %v2009_v51 = vadd.f32 0.5, %v1993_v5 }
 0x52f   :  { %v2929_v29 = vpop.eup %2928  ;;  %v1969_v3 = vadd.f32 %v2682_v0, %v1806_v56  ;;  %v1945_v52 = vpop.f32.mrb[79].mxu0  ;;  %v2008_v62 = vadd.f32 0.5, %v1992_v50 }
 0x530   :  { %v2931_v60 = vpop.eup %2930  ;;  %v2023_v26 = vmul.f32 %v2929_v29, %v2003_v48  ;;  %v1968_v35 = vadd.f32 %v1945_v52, %v1803_v47  ;;  %v2021_v4 = vmul.f32 %v2009_v51, %v3840_v30 }
 0x531   :  { %v2022_v45 = vmul.f32 %v2931_v60, %v2002_v11  ;;  %2940 = vtanh.f32 %v1969_v3  ;;  %v2020_v1 = vmul.f32 %v2008_v62, %v3842_v42 }
 0x532   :  { %v2027_v14 = vadd.f32 %v2023_v26, %v2019_v40  ;;  %2942 = vtanh.f32 %v1968_v35 }
 0x533   :  { %v2933_v10 = vpop.eup %2932  ;;  %v2026_v44 = vadd.f32 %v2022_v45, %v2018_v49 }
 0x534   :  { %v2935_v8 = vpop.eup %2934  ;;  %2944 = vtanh.f32 %v2027_v14  ;;  %v2025_v54 = vmul.f32 %v2933_v10, %v2005_v34 }
 0x535   :  { %2946 = vtanh.f32 %v2026_v44  ;;  %v2024_v37 = vmul.f32 %v2935_v8, %v2004_v55 }
 0x536   :  { %v2029_v63 = vadd.f32 %v2025_v54, %v2021_v4 }
 0x537   :  { %v2937_v61 = vpop.eup %2936  ;;  %v2028_v20 = vadd.f32 %v2024_v37, %v2020_v1 }
 0x538   :  { %v2939_v38 = vpop.eup %2938  ;;  %2948 = vtanh.f32 %v2029_v63  ;;  %v1999_v9 = vmul.f32 0.5, %v2937_v61 }
 0x539   :  { %2950 = vtanh.f32 %v2028_v20  ;;  %v1998_v59 = vmul.f32 0.5, %v2939_v38 }
 0x53a   :  { %v2015_v2 = vadd.f32 0.5, %v1999_v9 }
 0x53b   :  { %v2941_v33 = vpop.eup %2940  ;;  %v2014_v30 = vadd.f32 0.5, %v1998_v59 }
 0x53c   :  { %v2943_v6 = vpop.eup %2942  ;;  %v2001_v58 = vmul.f32 0.5, %v2941_v33 }
 0x53d   :  { %v2000_v46 = vmul.f32 0.5, %v2943_v6 }
 0x53e   :  { %v2945_v41 = vpop.eup %2944  ;;  %v2017_v18 = vadd.f32 0.5, %v2001_v58 }
 0x53f   :  { %v2947_v13 = vpop.eup %2946  ;;  %v2035_v7 = vmul.f32 %v2945_v41, %v2015_v2  ;;  %v2016_v25 = vadd.f32 0.5, %v2000_v46 }
 0x540   :  { %v2034_v42 = vmul.f32 %v2947_v13, %v2014_v30 }
 0x542   :  { %v2949_v57 = vpop.eup %2948  ;;  %v2727_v43 = vpack.c.bf16 %v2035_v7, %v2034_v42 }
 0x543   :  { %v2951_v15 = vpop.eup %2950  ;;  %v2037_v16 = vmul.f32 %v2949_v57, %v2017_v18 }
 0x544   :  { %v2036_v24 = vmul.f32 %v2951_v15, %v2016_v25  ;;  %2728 = vmatpush3.bf16.msra.mxu1 %v2727_v43 }
 0x545   :  { %2729 = vmatprep.subr.bf16.mxu1 %v2998_v39 }
 0x546   :  { %v2730_v17 = vpack.c.bf16 %v2037_v16, %v2036_v24 }
 0x548   :  { %2731 = vmatpush3.bf16.msra.mxu1 %v2730_v17 }
 0x54b   :  { %2692 = vmatmul.mubr.msk.f32.vlgmr.msra.gmra.mrb[80].mxu1 %vm420_vm0, %v2038_v22 }
 0x61e   :  { %v2114_v31 = vpop.f32.mrb[80].mxu1 }
 0x61f   :  { %v2115_v32 = vadd.f32 %v2114_v31, %v2043_v27  ;;  %v2693_v36 = vpop.f32.mrb[81].mxu1 }
 0x621   :  { %v2118_v5 = vrot.slane %v2115_v32, 4 }
 0x623   :  { %v2119_v23 = vmax.f32 %v2115_v32, %v2118_v5 }
 0x625   :  { %v2120_v21 = vrot.slane %v2119_v23, 2 }
 0x627   :  { %v2121_v56 = vmax.f32 %v2119_v23, %v2120_v21 }
 0x629   :  { %v2122_v12 = vrot.slane %v2121_v56, 1 }
 0x62b   :  { %v2123_v50 = vmax.f32 %v2121_v56, %v2122_v12 }
 0x62d   :  { %v2124_v28 = vsub.f32 %v2115_v32, %v2123_v50 }
 0x62f   :  { %v2125_v39 = vmul.f32 1.442695, %v2124_v28 }
 0x631   :  { %2952 = vpow2.f32 %v2125_v39 }
 0x63b   :  { %v2953_v47 = vpop.eup %2952 }
 0x63c   :  { %v2127_v48 = vrot.slane %v2953_v47, 4 }
 0x63e   :  { %v2128_v19 = vadd.f32 %v2953_v47, %v2127_v48 }
 0x640   :  { %v2129_v0 = vrot.slane %v2128_v19, 2 }
 0x642   :  { %v2130_v29 = vadd.f32 %v2129_v0, %v2128_v19 }
 0x644   :  { %v2131_v11 = vrot.slane %v2130_v29, 1 }
 0x646   :  { %v2132_v53 = vadd.f32 %v2131_v11, %v2130_v29 }
 0x648   :  { %2954 = vrcp.f32 %v2132_v53 }
 0x652   :  { %v2955_v3 = vpop.eup %2954 }
 0x653   :  { %v2134_v52 = vmul.f32 %v2955_v3, %v2953_v47 }
 0x655   :  { %2135 = vst [vmem:[#allocation2] sm:$0xff] %v2134_v52 }
 0x656   :  { %2983 = shalt.err (!%p2980_p4)
}
 0x657   :  { %s2984_s21 = scalar_lea.hbm %s3937_s6, 128 }
 0x658   :  { %p2985_p5 = scmp.ne.s32.totalorder %s3937_s6, %s2984_s21  ;;  %p2988_p6 = scmp.lt.u32.totalorder %s2984_s21, %s3937_s6 }
 0x65a   :  { %p2990_p7 = pnand %p2988_p6, %p2985_p5 }
 0x65c   :  { %2993 = shalt.err (!%p2990_p7)
}
 0x65d   :  { %2145 = dma.vmem_to_hbm [thread:$0]  %s2143_s18, 128, %s3937_s6, [#allocation3]  }
 0x65e   :  { %2994 = dma.done.wait [#allocation3], 128  }
 0x65f   :  { %2995 = vsyncadd [#allocation3], 4294967168 }
 0x660   :  { %2149 = vsyncpa [#allocation3], 1 }

</bundles_post_ra>
